<compile_context>
chip_gen: v6e
topology: v6e:2x2x1
jax: 0.10.0
libtpu: 0.0.40
codegen_flags: <defaults>
</compile_context>

<pallas_src>
import functools

import jax
import jax.numpy as jnp
from jax import lax
from jax.experimental import pallas as pl
from jax.experimental.pallas import tpu as pltpu

# Layer widths: 12 -> 24 -> 48 -> 96 -> 192 -> 96 -> 48 -> 24 -> 12 -> 4 -> 1
DIMS = [12, 24, 48, 96, 192, 96, 48, 24, 12, 4, 1]
NUM_LAYERS = len(DIMS) - 1          # 10
MXU_LAYERS = NUM_LAYERS - 2         # first 8 layers on the MXU
W_PAD_OUT = max(DIMS[l + 1] for l in range(MXU_LAYERS))   # 192
W_PAD_IN = max(DIMS[l] for l in range(MXU_LAYERS))        # 192


def _round_up(n, m):
    return (n + m - 1) // m * m


def _tensorcores_per_chip():
    """Best-effort TC count; default to 1 (safe: skip tile-halving)."""
    try:
        dev = jax.devices()[0]
        kind = (getattr(dev, "device_kind", "") or "").lower()
        if "lite" in kind or "v5e" in kind or "v6e" in kind:
            return 1
        return max(int(getattr(dev, "num_cores", 1) or 1), 1)
    except Exception:
        return 1


def mlp_kernel(x_ref, w_ref, b_ref, w9_ref, b9_ref, w10_ref, b10_ref, out_ref):
    """x_ref:   (12, bb)  f32, batch on the lane axis
    w_ref:   (8, 192, 192) f32 VMEM slab, layer l's W at [l, :out, :in]
    b_ref:   (8, 192, 1)   f32 VMEM slab, layer l's bias at [l, :out, 0]
    w9_ref:  (4, 12) f32 SMEM   b9_ref: (4,) f32 SMEM
    w10_ref: (4,)   f32 SMEM   b10_ref: (1,) f32 SMEM
    out_ref: (1, bb) f32, lane-dense output slab
    """
    h = x_ref[...]  # (12, bb) f32

    # --- 8 MXU layers: h <- relu(W_l @ h + b_l), bf16 inputs, f32 accumulate.
    for l in range(MXU_LAYERS):
        in_d, out_d = DIMS[l], DIMS[l + 1]
        w = w_ref[l, :out_d, :in_d].astype(jnp.bfloat16)       # (out, in)
        b = b_ref[l, :out_d, :]                                 # (out, 1) f32
        acc = lax.dot_general(
            w, h.astype(jnp.bfloat16),
            dimension_numbers=(((1,), (0,)), ((), ())),
            preferred_element_type=jnp.float32)                 # (out, bb) f32
        h = jnp.maximum(acc + b, 0.0)                           # bias + ReLU

    # --- Tail layers (12 -> 4 -> 1) on the VPU with SMEM scalar weights.
    # h is (12, bb) f32 here.
    out = None
    for j in range(DIMS[9]):                     # 4 hidden units of layer 9
        acc_j = h[0:1, :] * w9_ref[j, 0]
        for k in range(1, DIMS[8]):              # 12 inputs
            acc_j = acc_j + h[k:k + 1, :] * w9_ref[j, k]
        acc_j = jnp.maximum(acc_j + b9_ref[j], 0.0)             # ReLU (layer 9)
        term = acc_j * w10_ref[j]                               # layer 10 weight
        out = term if out is None else out + term
    out_ref[...] = (out + b10_ref[0]).astype(out_ref.dtype)     # layer 10 bias


@functools.partial(jax.jit, static_argnames=("block_batch",))
def distance_spherical_forward(x, params, block_batch=4096):
    """x: (batch, 12) f32.  params: list of (W_l (out,in), b_l (out,1))."""
    batch = x.shape[0]

    # Lane-dense batch tile (multiple of 128), as large as batch/VMEM allow.
    bb = min(block_batch, _round_up(batch, 128))
    bb = max(128, _round_up(bb, 128))
    bb = min(bb, 8192)
    # Only split a lone tile when the chip has >1 TensorCore (e.g. v7x);
    # on single-TC v5e/v6e a second grid step is pure overhead.
    if _tensorcores_per_chip() >= 2 and _round_up(batch, bb) // bb < 2 and bb > 128:
        bb = _round_up(bb // 2, 128)
    padded = _round_up(batch, bb)
    grid = (padded // bb,)

    # Batch on the lane (last) axis; pad to a whole number of tiles.
    xt = x.astype(jnp.float32).T                     # (12, batch)
    if padded != batch:
        xt = jnp.pad(xt, ((0, 0), (0, padded - batch)))

    # Pack the 8 MXU layers into one weight slab + one bias slab.
    w_slab = jnp.zeros((MXU_LAYERS, W_PAD_OUT, W_PAD_IN), jnp.float32)
    b_slab = jnp.zeros((MXU_LAYERS, W_PAD_OUT, 1), jnp.float32)
    for l in range(MXU_LAYERS):
        w, b = params[l]
        w_slab = w_slab.at[l, : w.shape[0], : w.shape[1]].set(w.astype(jnp.float32))
        b_slab = b_slab.at[l, : b.shape[0], :].set(b.astype(jnp.float32))

    # Tail layers (12->4->1) as SMEM scalars.
    w9 = params[8][0].astype(jnp.float32)            # (4, 12)
    b9 = params[8][1].astype(jnp.float32)[:, 0]      # (4,)
    w10 = params[9][0].astype(jnp.float32)[0, :]     # (4,)
    b10 = params[9][1].astype(jnp.float32)[:, 0]     # (1,)

    vmem_limit = (48 if bb > 4096 else 32) * 1024 * 1024

    out = pl.pallas_call(
        mlp_kernel,
        out_shape=jax.ShapeDtypeStruct((1, padded), jnp.float32),
        grid_spec=pltpu.PrefetchScalarGridSpec(
            num_scalar_prefetch=0,
            grid=grid,
            in_specs=[
                pl.BlockSpec((DIMS[0], bb), lambda i: (0, i)),
                pl.BlockSpec((MXU_LAYERS, W_PAD_OUT, W_PAD_IN),
                             lambda i: (0, 0, 0)),
                pl.BlockSpec((MXU_LAYERS, W_PAD_OUT, 1), lambda i: (0, 0, 0)),
                pl.BlockSpec(memory_space=pltpu.MemorySpace.SMEM),
                pl.BlockSpec(memory_space=pltpu.MemorySpace.SMEM),
                pl.BlockSpec(memory_space=pltpu.MemorySpace.SMEM),
                pl.BlockSpec(memory_space=pltpu.MemorySpace.SMEM),
            ],
            out_specs=pl.BlockSpec((1, bb), lambda i: (0, i)),
        ),
        compiler_params=pltpu.CompilerParams(
            dimension_semantics=("parallel",),
            vmem_limit_bytes=vmem_limit,
        ),
    )(xt, w_slab, b_slab, w9, b9, w10, b10)

    # Back to the PyTorch (batch, 1) shape.
    return out[0, :batch][:, None].astype(x.dtype)


def init_params(key):
    """nn.Linear default init: uniform(+/- 1/sqrt(fan_in)) for weight and bias.

    Weights kept in PyTorch's (out, in) layout; biases as (out, 1) columns.
    """
    params = []
    for layer in range(NUM_LAYERS):
        fan_in, fan_out = DIMS[layer], DIMS[layer + 1]
        key, kw, kb = jax.random.split(key, 3)
        bound = 1.0 / jnp.sqrt(float(fan_in))
        w = jax.random.uniform(kw, (fan_out, fan_in), jnp.float32, -bound, bound)
        b = jax.random.uniform(kb, (fan_out, 1), jnp.float32, -bound, bound)
        params.append((w, b))
    return params


def reference_forward(x, params, match_bf16=True):
    """Pure-JAX reference. match_bf16=True mimics the kernel's bf16 MXU layers
    (first 8); the two tail layers are f32 in the kernel as well."""
    h = x
    for layer, (w, b) in enumerate(params):
        if match_bf16 and layer < NUM_LAYERS - 2:
            z = jnp.dot(h.astype(jnp.bfloat16), w.astype(jnp.bfloat16).T,
                        preferred_element_type=jnp.float32)
        else:
            z = jnp.dot(h, w.T)
        h = z + b[:, 0][None, :]
        if layer < NUM_LAYERS - 1:
            h = jnp.maximum(h, 0.0)
    return h


if __name__ == "__main__":
    key = jax.random.PRNGKey(0)
    key, kx = jax.random.split(key)

    batch = 256
    x = jax.random.normal(kx, (batch, DIMS[0]), jnp.float32)
    params = init_params(key)

    out = distance_spherical_forward(x, params)
    out = jax.block_until_ready(out)
    assert out.shape == (batch, 1), out.shape

    # Tight check vs a reference using the same bf16 MXU inputs.
    ref_bf16 = reference_forward(x, params, match_bf16=True)
    assert jnp.allclose(out, ref_bf16, atol=1e-3, rtol=1e-3), "mismatch vs bf16 reference"

    # Loose check vs the pure-f32 (PyTorch-equivalent) forward.
    ref_f32 = reference_forward(x, params, match_bf16=False)
    assert jnp.allclose(out, ref_f32, atol=3e-2, rtol=3e-2), "mismatch vs f32 reference"

    print("KERNEL_OK")
</pallas_src>

<mosaic_0001>
module attributes {stable_mosaic.version = 11 : i64} {
  func.func @mlp_kernel(%arg0: i32, %arg1: memref<12x256xf32, #tpu.memory_space<vmem>>, %arg2: memref<8x192x192xf32, #tpu.memory_space<vmem>>, %arg3: memref<8x192x1xf32, #tpu.memory_space<vmem>>, %arg4: memref<4x12xf32, #tpu.memory_space<smem>>, %arg5: memref<4xf32, #tpu.memory_space<smem>>, %arg6: memref<4xf32, #tpu.memory_space<smem>>, %arg7: memref<1xf32, #tpu.memory_space<smem>>, %arg8: memref<1x256xf32, #tpu.memory_space<vmem>>) attributes {dimension_semantics = [#tpu.dimension_semantics<parallel>], iteration_bounds = array<i64: 1>, scalar_prefetch = 0 : i64, scratch_operands = 0 : i64, tpu.core_type = #tpu.core_type<tc>, window_params = [{transform_indices = @transform_0, window_bounds = array<i64: 12, 256>}, {pipeline_mode = #tpu.pipeline_mode<synchronous>, transform_indices = @transform_1, window_bounds = array<i64: 8, 192, 192>}, {pipeline_mode = #tpu.pipeline_mode<synchronous>, transform_indices = @transform_2, window_bounds = array<i64: 8, 192, 1>}, {transform_indices = @transform_3, window_bounds = array<i64: 4, 12>}, {transform_indices = @transform_4, window_bounds = array<i64: 4>}, {transform_indices = @transform_5, window_bounds = array<i64: 4>}, {transform_indices = @transform_6, window_bounds = array<i64: 1>}, {transform_indices = @transform_7, window_bounds = array<i64: 1, 256>}]} {
    %c0 = arith.constant 0 : index
    %c0_0 = arith.constant 0 : index
    %0 = vector.load %arg1[%c0, %c0_0] : memref<12x256xf32, #tpu.memory_space<vmem>>, vector<12x256xf32>
    %c0_1 = arith.constant 0 : index
    %c0_2 = arith.constant 0 : index
    %c0_3 = arith.constant 0 : index
    %1 = vector.load %arg2[%c0_1, %c0_2, %c0_3] : memref<8x192x192xf32, #tpu.memory_space<vmem>>, vector<1x24x12xf32>
    %2 = vector.shape_cast %1 : vector<1x24x12xf32> to vector<24x12xf32>
    %3 = arith.truncf %2 : vector<24x12xf32> to vector<24x12xbf16>
    %c0_4 = arith.constant 0 : index
    %c0_5 = arith.constant 0 : index
    %c0_6 = arith.constant 0 : index
    %4 = vector.load %arg3[%c0_4, %c0_5, %c0_6] : memref<8x192x1xf32, #tpu.memory_space<vmem>>, vector<1x24x1xf32>
    %5 = vector.shape_cast %4 : vector<1x24x1xf32> to vector<24x1xf32>
    %6 = arith.truncf %0 : vector<12x256xf32> to vector<12x256xbf16>
    %cst = arith.constant dense<0.000000e+00> : vector<24x256xf32>
    %7 = tpu.matmul %3, %6, %cst {dimension_numbers = #tpu.dot_dimension_numbers<[1], [0], [0], [1], [0, 0, 1, 1], [], []>} : vector<24x12xbf16>, vector<12x256xbf16>, vector<24x256xf32> -> vector<24x256xf32>
    %8 = vector.broadcast %5 : vector<24x1xf32> to vector<24x256xf32>
    %9 = arith.addf %7, %8 : vector<24x256xf32>
    %cst_7 = arith.constant 0.000000e+00 : f32
    %10 = vector.broadcast %cst_7 : f32 to vector<24x256xf32>
    %11 = arith.maximumf %9, %10 : vector<24x256xf32>
    %c1 = arith.constant 1 : index
    %c0_8 = arith.constant 0 : index
    %c0_9 = arith.constant 0 : index
    %12 = vector.load %arg2[%c1, %c0_8, %c0_9] : memref<8x192x192xf32, #tpu.memory_space<vmem>>, vector<1x48x24xf32>
    %13 = vector.shape_cast %12 : vector<1x48x24xf32> to vector<48x24xf32>
    %14 = arith.truncf %13 : vector<48x24xf32> to vector<48x24xbf16>
    %c1_10 = arith.constant 1 : index
    %c0_11 = arith.constant 0 : index
    %c0_12 = arith.constant 0 : index
    %15 = vector.load %arg3[%c1_10, %c0_11, %c0_12] : memref<8x192x1xf32, #tpu.memory_space<vmem>>, vector<1x48x1xf32>
    %16 = vector.shape_cast %15 : vector<1x48x1xf32> to vector<48x1xf32>
    %17 = arith.truncf %11 : vector<24x256xf32> to vector<24x256xbf16>
    %cst_13 = arith.constant dense<0.000000e+00> : vector<48x256xf32>
    %18 = tpu.matmul %14, %17, %cst_13 {dimension_numbers = #tpu.dot_dimension_numbers<[1], [0], [0], [1], [0, 0, 1, 1], [], []>} : vector<48x24xbf16>, vector<24x256xbf16>, vector<48x256xf32> -> vector<48x256xf32>
    %19 = vector.broadcast %16 : vector<48x1xf32> to vector<48x256xf32>
    %20 = arith.addf %18, %19 : vector<48x256xf32>
    %cst_14 = arith.constant 0.000000e+00 : f32
    %21 = vector.broadcast %cst_14 : f32 to vector<48x256xf32>
    %22 = arith.maximumf %20, %21 : vector<48x256xf32>
    %c2 = arith.constant 2 : index
    %c0_15 = arith.constant 0 : index
    %c0_16 = arith.constant 0 : index
    %23 = vector.load %arg2[%c2, %c0_15, %c0_16] : memref<8x192x192xf32, #tpu.memory_space<vmem>>, vector<1x96x48xf32>
    %24 = vector.shape_cast %23 : vector<1x96x48xf32> to vector<96x48xf32>
    %25 = arith.truncf %24 : vector<96x48xf32> to vector<96x48xbf16>
    %c2_17 = arith.constant 2 : index
    %c0_18 = arith.constant 0 : index
    %c0_19 = arith.constant 0 : index
    %26 = vector.load %arg3[%c2_17, %c0_18, %c0_19] : memref<8x192x1xf32, #tpu.memory_space<vmem>>, vector<1x96x1xf32>
    %27 = vector.shape_cast %26 : vector<1x96x1xf32> to vector<96x1xf32>
    %28 = arith.truncf %22 : vector<48x256xf32> to vector<48x256xbf16>
    %cst_20 = arith.constant dense<0.000000e+00> : vector<96x256xf32>
    %29 = tpu.matmul %25, %28, %cst_20 {dimension_numbers = #tpu.dot_dimension_numbers<[1], [0], [0], [1], [0, 0, 1, 1], [], []>} : vector<96x48xbf16>, vector<48x256xbf16>, vector<96x256xf32> -> vector<96x256xf32>
    %30 = vector.broadcast %27 : vector<96x1xf32> to vector<96x256xf32>
    %31 = arith.addf %29, %30 : vector<96x256xf32>
    %cst_21 = arith.constant 0.000000e+00 : f32
    %32 = vector.broadcast %cst_21 : f32 to vector<96x256xf32>
    %33 = arith.maximumf %31, %32 : vector<96x256xf32>
    %c3 = arith.constant 3 : index
    %c0_22 = arith.constant 0 : index
    %c0_23 = arith.constant 0 : index
    %34 = vector.load %arg2[%c3, %c0_22, %c0_23] : memref<8x192x192xf32, #tpu.memory_space<vmem>>, vector<1x192x96xf32>
    %35 = vector.shape_cast %34 : vector<1x192x96xf32> to vector<192x96xf32>
    %36 = arith.truncf %35 : vector<192x96xf32> to vector<192x96xbf16>
    %c3_24 = arith.constant 3 : index
    %c0_25 = arith.constant 0 : index
    %c0_26 = arith.constant 0 : index
    %37 = vector.load %arg3[%c3_24, %c0_25, %c0_26] : memref<8x192x1xf32, #tpu.memory_space<vmem>>, vector<1x192x1xf32>
    %38 = vector.shape_cast %37 : vector<1x192x1xf32> to vector<192x1xf32>
    %39 = arith.truncf %33 : vector<96x256xf32> to vector<96x256xbf16>
    %cst_27 = arith.constant dense<0.000000e+00> : vector<192x256xf32>
    %40 = tpu.matmul %36, %39, %cst_27 {dimension_numbers = #tpu.dot_dimension_numbers<[1], [0], [0], [1], [0, 0, 1, 1], [], []>} : vector<192x96xbf16>, vector<96x256xbf16>, vector<192x256xf32> -> vector<192x256xf32>
    %41 = vector.broadcast %38 : vector<192x1xf32> to vector<192x256xf32>
    %42 = arith.addf %40, %41 : vector<192x256xf32>
    %cst_28 = arith.constant 0.000000e+00 : f32
    %43 = vector.broadcast %cst_28 : f32 to vector<192x256xf32>
    %44 = arith.maximumf %42, %43 : vector<192x256xf32>
    %c4 = arith.constant 4 : index
    %c0_29 = arith.constant 0 : index
    %c0_30 = arith.constant 0 : index
    %45 = vector.load %arg2[%c4, %c0_29, %c0_30] : memref<8x192x192xf32, #tpu.memory_space<vmem>>, vector<1x96x192xf32>
    %46 = vector.shape_cast %45 : vector<1x96x192xf32> to vector<96x192xf32>
    %47 = arith.truncf %46 : vector<96x192xf32> to vector<96x192xbf16>
    %c4_31 = arith.constant 4 : index
    %c0_32 = arith.constant 0 : index
    %c0_33 = arith.constant 0 : index
    %48 = vector.load %arg3[%c4_31, %c0_32, %c0_33] : memref<8x192x1xf32, #tpu.memory_space<vmem>>, vector<1x96x1xf32>
    %49 = vector.shape_cast %48 : vector<1x96x1xf32> to vector<96x1xf32>
    %50 = arith.truncf %44 : vector<192x256xf32> to vector<192x256xbf16>
    %cst_34 = arith.constant dense<0.000000e+00> : vector<96x256xf32>
    %51 = tpu.matmul %47, %50, %cst_34 {dimension_numbers = #tpu.dot_dimension_numbers<[1], [0], [0], [1], [0, 0, 1, 1], [], []>} : vector<96x192xbf16>, vector<192x256xbf16>, vector<96x256xf32> -> vector<96x256xf32>
    %52 = vector.broadcast %49 : vector<96x1xf32> to vector<96x256xf32>
    %53 = arith.addf %51, %52 : vector<96x256xf32>
    %cst_35 = arith.constant 0.000000e+00 : f32
    %54 = vector.broadcast %cst_35 : f32 to vector<96x256xf32>
    %55 = arith.maximumf %53, %54 : vector<96x256xf32>
    %c5 = arith.constant 5 : index
    %c0_36 = arith.constant 0 : index
    %c0_37 = arith.constant 0 : index
    %56 = vector.load %arg2[%c5, %c0_36, %c0_37] : memref<8x192x192xf32, #tpu.memory_space<vmem>>, vector<1x48x96xf32>
    %57 = vector.shape_cast %56 : vector<1x48x96xf32> to vector<48x96xf32>
    %58 = arith.truncf %57 : vector<48x96xf32> to vector<48x96xbf16>
    %c5_38 = arith.constant 5 : index
    %c0_39 = arith.constant 0 : index
    %c0_40 = arith.constant 0 : index
    %59 = vector.load %arg3[%c5_38, %c0_39, %c0_40] : memref<8x192x1xf32, #tpu.memory_space<vmem>>, vector<1x48x1xf32>
    %60 = vector.shape_cast %59 : vector<1x48x1xf32> to vector<48x1xf32>
    %61 = arith.truncf %55 : vector<96x256xf32> to vector<96x256xbf16>
    %cst_41 = arith.constant dense<0.000000e+00> : vector<48x256xf32>
    %62 = tpu.matmul %58, %61, %cst_41 {dimension_numbers = #tpu.dot_dimension_numbers<[1], [0], [0], [1], [0, 0, 1, 1], [], []>} : vector<48x96xbf16>, vector<96x256xbf16>, vector<48x256xf32> -> vector<48x256xf32>
    %63 = vector.broadcast %60 : vector<48x1xf32> to vector<48x256xf32>
    %64 = arith.addf %62, %63 : vector<48x256xf32>
    %cst_42 = arith.constant 0.000000e+00 : f32
    %65 = vector.broadcast %cst_42 : f32 to vector<48x256xf32>
    %66 = arith.maximumf %64, %65 : vector<48x256xf32>
    %c6 = arith.constant 6 : index
    %c0_43 = arith.constant 0 : index
    %c0_44 = arith.constant 0 : index
    %67 = vector.load %arg2[%c6, %c0_43, %c0_44] : memref<8x192x192xf32, #tpu.memory_space<vmem>>, vector<1x24x48xf32>
    %68 = vector.shape_cast %67 : vector<1x24x48xf32> to vector<24x48xf32>
    %69 = arith.truncf %68 : vector<24x48xf32> to vector<24x48xbf16>
    %c6_45 = arith.constant 6 : index
    %c0_46 = arith.constant 0 : index
    %c0_47 = arith.constant 0 : index
    %70 = vector.load %arg3[%c6_45, %c0_46, %c0_47] : memref<8x192x1xf32, #tpu.memory_space<vmem>>, vector<1x24x1xf32>
    %71 = vector.shape_cast %70 : vector<1x24x1xf32> to vector<24x1xf32>
    %72 = arith.truncf %66 : vector<48x256xf32> to vector<48x256xbf16>
    %cst_48 = arith.constant dense<0.000000e+00> : vector<24x256xf32>
    %73 = tpu.matmul %69, %72, %cst_48 {dimension_numbers = #tpu.dot_dimension_numbers<[1], [0], [0], [1], [0, 0, 1, 1], [], []>} : vector<24x48xbf16>, vector<48x256xbf16>, vector<24x256xf32> -> vector<24x256xf32>
    %74 = vector.broadcast %71 : vector<24x1xf32> to vector<24x256xf32>
    %75 = arith.addf %73, %74 : vector<24x256xf32>
    %cst_49 = arith.constant 0.000000e+00 : f32
    %76 = vector.broadcast %cst_49 : f32 to vector<24x256xf32>
    %77 = arith.maximumf %75, %76 : vector<24x256xf32>
    %c7 = arith.constant 7 : index
    %c0_50 = arith.constant 0 : index
    %c0_51 = arith.constant 0 : index
    %78 = vector.load %arg2[%c7, %c0_50, %c0_51] : memref<8x192x192xf32, #tpu.memory_space<vmem>>, vector<1x12x24xf32>
    %79 = vector.shape_cast %78 : vector<1x12x24xf32> to vector<12x24xf32>
    %80 = arith.truncf %79 : vector<12x24xf32> to vector<12x24xbf16>
    %c7_52 = arith.constant 7 : index
    %c0_53 = arith.constant 0 : index
    %c0_54 = arith.constant 0 : index
    %81 = vector.load %arg3[%c7_52, %c0_53, %c0_54] : memref<8x192x1xf32, #tpu.memory_space<vmem>>, vector<1x12x1xf32>
    %82 = vector.shape_cast %81 : vector<1x12x1xf32> to vector<12x1xf32>
    %83 = arith.truncf %77 : vector<24x256xf32> to vector<24x256xbf16>
    %cst_55 = arith.constant dense<0.000000e+00> : vector<12x256xf32>
    %84 = tpu.matmul %80, %83, %cst_55 {dimension_numbers = #tpu.dot_dimension_numbers<[1], [0], [0], [1], [0, 0, 1, 1], [], []>} : vector<12x24xbf16>, vector<24x256xbf16>, vector<12x256xf32> -> vector<12x256xf32>
    %85 = vector.broadcast %82 : vector<12x1xf32> to vector<12x256xf32>
    %86 = arith.addf %84, %85 : vector<12x256xf32>
    %cst_56 = arith.constant 0.000000e+00 : f32
    %87 = vector.broadcast %cst_56 : f32 to vector<12x256xf32>
    %88 = arith.maximumf %86, %87 : vector<12x256xf32>
    %89 = vector.extract_strided_slice %88 {offsets = [0, 0], sizes = [1, 256], strides = [1, 1]} : vector<12x256xf32> to vector<1x256xf32>
    %c0_57 = arith.constant 0 : index
    %c0_58 = arith.constant 0 : index
    %90 = memref.load %arg4[%c0_57, %c0_58] : memref<4x12xf32, #tpu.memory_space<smem>>
    %91 = vector.broadcast %90 : f32 to vector<1x256xf32>
    %92 = arith.mulf %89, %91 : vector<1x256xf32>
    %93 = vector.extract_strided_slice %88 {offsets = [1, 0], sizes = [1, 256], strides = [1, 1]} : vector<12x256xf32> to vector<1x256xf32>
    %c0_59 = arith.constant 0 : index
    %c1_60 = arith.constant 1 : index
    %94 = memref.load %arg4[%c0_59, %c1_60] : memref<4x12xf32, #tpu.memory_space<smem>>
    %95 = vector.broadcast %94 : f32 to vector<1x256xf32>
    %96 = arith.mulf %93, %95 : vector<1x256xf32>
    %97 = arith.addf %92, %96 : vector<1x256xf32>
    %98 = vector.extract_strided_slice %88 {offsets = [2, 0], sizes = [1, 256], strides = [1, 1]} : vector<12x256xf32> to vector<1x256xf32>
    %c0_61 = arith.constant 0 : index
    %c2_62 = arith.constant 2 : index
    %99 = memref.load %arg4[%c0_61, %c2_62] : memref<4x12xf32, #tpu.memory_space<smem>>
    %100 = vector.broadcast %99 : f32 to vector<1x256xf32>
    %101 = arith.mulf %98, %100 : vector<1x256xf32>
    %102 = arith.addf %97, %101 : vector<1x256xf32>
    %103 = vector.extract_strided_slice %88 {offsets = [3, 0], sizes = [1, 256], strides = [1, 1]} : vector<12x256xf32> to vector<1x256xf32>
    %c0_63 = arith.constant 0 : index
    %c3_64 = arith.constant 3 : index
    %104 = memref.load %arg4[%c0_63, %c3_64] : memref<4x12xf32, #tpu.memory_space<smem>>
    %105 = vector.broadcast %104 : f32 to vector<1x256xf32>
    %106 = arith.mulf %103, %105 : vector<1x256xf32>
    %107 = arith.addf %102, %106 : vector<1x256xf32>
    %108 = vector.extract_strided_slice %88 {offsets = [4, 0], sizes = [1, 256], strides = [1, 1]} : vector<12x256xf32> to vector<1x256xf32>
    %c0_65 = arith.constant 0 : index
    %c4_66 = arith.constant 4 : index
    %109 = memref.load %arg4[%c0_65, %c4_66] : memref<4x12xf32, #tpu.memory_space<smem>>
    %110 = vector.broadcast %109 : f32 to vector<1x256xf32>
    %111 = arith.mulf %108, %110 : vector<1x256xf32>
    %112 = arith.addf %107, %111 : vector<1x256xf32>
    %113 = vector.extract_strided_slice %88 {offsets = [5, 0], sizes = [1, 256], strides = [1, 1]} : vector<12x256xf32> to vector<1x256xf32>
    %c0_67 = arith.constant 0 : index
    %c5_68 = arith.constant 5 : index
    %114 = memref.load %arg4[%c0_67, %c5_68] : memref<4x12xf32, #tpu.memory_space<smem>>
    %115 = vector.broadcast %114 : f32 to vector<1x256xf32>
    %116 = arith.mulf %113, %115 : vector<1x256xf32>
    %117 = arith.addf %112, %116 : vector<1x256xf32>
    %118 = vector.extract_strided_slice %88 {offsets = [6, 0], sizes = [1, 256], strides = [1, 1]} : vector<12x256xf32> to vector<1x256xf32>
    %c0_69 = arith.constant 0 : index
    %c6_70 = arith.constant 6 : index
    %119 = memref.load %arg4[%c0_69, %c6_70] : memref<4x12xf32, #tpu.memory_space<smem>>
    %120 = vector.broadcast %119 : f32 to vector<1x256xf32>
    %121 = arith.mulf %118, %120 : vector<1x256xf32>
    %122 = arith.addf %117, %121 : vector<1x256xf32>
    %123 = vector.extract_strided_slice %88 {offsets = [7, 0], sizes = [1, 256], strides = [1, 1]} : vector<12x256xf32> to vector<1x256xf32>
    %c0_71 = arith.constant 0 : index
    %c7_72 = arith.constant 7 : index
    %124 = memref.load %arg4[%c0_71, %c7_72] : memref<4x12xf32, #tpu.memory_space<smem>>
    %125 = vector.broadcast %124 : f32 to vector<1x256xf32>
    %126 = arith.mulf %123, %125 : vector<1x256xf32>
    %127 = arith.addf %122, %126 : vector<1x256xf32>
    %128 = vector.extract_strided_slice %88 {offsets = [8, 0], sizes = [1, 256], strides = [1, 1]} : vector<12x256xf32> to vector<1x256xf32>
    %c0_73 = arith.constant 0 : index
    %c8 = arith.constant 8 : index
    %129 = memref.load %arg4[%c0_73, %c8] : memref<4x12xf32, #tpu.memory_space<smem>>
    %130 = vector.broadcast %129 : f32 to vector<1x256xf32>
    %131 = arith.mulf %128, %130 : vector<1x256xf32>
    %132 = arith.addf %127, %131 : vector<1x256xf32>
    %133 = vector.extract_strided_slice %88 {offsets = [9, 0], sizes = [1, 256], strides = [1, 1]} : vector<12x256xf32> to vector<1x256xf32>
    %c0_74 = arith.constant 0 : index
    %c9 = arith.constant 9 : index
    %134 = memref.load %arg4[%c0_74, %c9] : memref<4x12xf32, #tpu.memory_space<smem>>
    %135 = vector.broadcast %134 : f32 to vector<1x256xf32>
    %136 = arith.mulf %133, %135 : vector<1x256xf32>
    %137 = arith.addf %132, %136 : vector<1x256xf32>
    %138 = vector.extract_strided_slice %88 {offsets = [10, 0], sizes = [1, 256], strides = [1, 1]} : vector<12x256xf32> to vector<1x256xf32>
    %c0_75 = arith.constant 0 : index
    %c10 = arith.constant 10 : index
    %139 = memref.load %arg4[%c0_75, %c10] : memref<4x12xf32, #tpu.memory_space<smem>>
    %140 = vector.broadcast %139 : f32 to vector<1x256xf32>
    %141 = arith.mulf %138, %140 : vector<1x256xf32>
    %142 = arith.addf %137, %141 : vector<1x256xf32>
    %143 = vector.extract_strided_slice %88 {offsets = [11, 0], sizes = [1, 256], strides = [1, 1]} : vector<12x256xf32> to vector<1x256xf32>
    %c0_76 = arith.constant 0 : index
    %c11 = arith.constant 11 : index
    %144 = memref.load %arg4[%c0_76, %c11] : memref<4x12xf32, #tpu.memory_space<smem>>
    %145 = vector.broadcast %144 : f32 to vector<1x256xf32>
    %146 = arith.mulf %143, %145 : vector<1x256xf32>
    %147 = arith.addf %142, %146 : vector<1x256xf32>
    %c0_77 = arith.constant 0 : index
    %148 = memref.load %arg5[%c0_77] : memref<4xf32, #tpu.memory_space<smem>>
    %149 = vector.broadcast %148 : f32 to vector<1x256xf32>
    %150 = arith.addf %147, %149 : vector<1x256xf32>
    %cst_78 = arith.constant 0.000000e+00 : f32
    %151 = vector.broadcast %cst_78 : f32 to vector<1x256xf32>
    %152 = arith.maximumf %150, %151 : vector<1x256xf32>
    %c0_79 = arith.constant 0 : index
    %153 = memref.load %arg6[%c0_79] : memref<4xf32, #tpu.memory_space<smem>>
    %154 = vector.broadcast %153 : f32 to vector<1x256xf32>
    %155 = arith.mulf %152, %154 : vector<1x256xf32>
    %156 = vector.extract_strided_slice %88 {offsets = [0, 0], sizes = [1, 256], strides = [1, 1]} : vector<12x256xf32> to vector<1x256xf32>
    %c1_80 = arith.constant 1 : index
    %c0_81 = arith.constant 0 : index
    %157 = memref.load %arg4[%c1_80, %c0_81] : memref<4x12xf32, #tpu.memory_space<smem>>
    %158 = vector.broadcast %157 : f32 to vector<1x256xf32>
    %159 = arith.mulf %156, %158 : vector<1x256xf32>
    %160 = vector.extract_strided_slice %88 {offsets = [1, 0], sizes = [1, 256], strides = [1, 1]} : vector<12x256xf32> to vector<1x256xf32>
    %c1_82 = arith.constant 1 : index
    %c1_83 = arith.constant 1 : index
    %161 = memref.load %arg4[%c1_82, %c1_83] : memref<4x12xf32, #tpu.memory_space<smem>>
    %162 = vector.broadcast %161 : f32 to vector<1x256xf32>
    %163 = arith.mulf %160, %162 : vector<1x256xf32>
    %164 = arith.addf %159, %163 : vector<1x256xf32>
    %165 = vector.extract_strided_slice %88 {offsets = [2, 0], sizes = [1, 256], strides = [1, 1]} : vector<12x256xf32> to vector<1x256xf32>
    %c1_84 = arith.constant 1 : index
    %c2_85 = arith.constant 2 : index
    %166 = memref.load %arg4[%c1_84, %c2_85] : memref<4x12xf32, #tpu.memory_space<smem>>
    %167 = vector.broadcast %166 : f32 to vector<1x256xf32>
    %168 = arith.mulf %165, %167 : vector<1x256xf32>
    %169 = arith.addf %164, %168 : vector<1x256xf32>
    %170 = vector.extract_strided_slice %88 {offsets = [3, 0], sizes = [1, 256], strides = [1, 1]} : vector<12x256xf32> to vector<1x256xf32>
    %c1_86 = arith.constant 1 : index
    %c3_87 = arith.constant 3 : index
    %171 = memref.load %arg4[%c1_86, %c3_87] : memref<4x12xf32, #tpu.memory_space<smem>>
    %172 = vector.broadcast %171 : f32 to vector<1x256xf32>
    %173 = arith.mulf %170, %172 : vector<1x256xf32>
    %174 = arith.addf %169, %173 : vector<1x256xf32>
    %175 = vector.extract_strided_slice %88 {offsets = [4, 0], sizes = [1, 256], strides = [1, 1]} : vector<12x256xf32> to vector<1x256xf32>
    %c1_88 = arith.constant 1 : index
    %c4_89 = arith.constant 4 : index
    %176 = memref.load %arg4[%c1_88, %c4_89] : memref<4x12xf32, #tpu.memory_space<smem>>
    %177 = vector.broadcast %176 : f32 to vector<1x256xf32>
    %178 = arith.mulf %175, %177 : vector<1x256xf32>
    %179 = arith.addf %174, %178 : vector<1x256xf32>
    %180 = vector.extract_strided_slice %88 {offsets = [5, 0], sizes = [1, 256], strides = [1, 1]} : vector<12x256xf32> to vector<1x256xf32>
    %c1_90 = arith.constant 1 : index
    %c5_91 = arith.constant 5 : index
    %181 = memref.load %arg4[%c1_90, %c5_91] : memref<4x12xf32, #tpu.memory_space<smem>>
    %182 = vector.broadcast %181 : f32 to vector<1x256xf32>
    %183 = arith.mulf %180, %182 : vector<1x256xf32>
    %184 = arith.addf %179, %183 : vector<1x256xf32>
    %185 = vector.extract_strided_slice %88 {offsets = [6, 0], sizes = [1, 256], strides = [1, 1]} : vector<12x256xf32> to vector<1x256xf32>
    %c1_92 = arith.constant 1 : index
    %c6_93 = arith.constant 6 : index
    %186 = memref.load %arg4[%c1_92, %c6_93] : memref<4x12xf32, #tpu.memory_space<smem>>
    %187 = vector.broadcast %186 : f32 to vector<1x256xf32>
    %188 = arith.mulf %185, %187 : vector<1x256xf32>
    %189 = arith.addf %184, %188 : vector<1x256xf32>
    %190 = vector.extract_strided_slice %88 {offsets = [7, 0], sizes = [1, 256], strides = [1, 1]} : vector<12x256xf32> to vector<1x256xf32>
    %c1_94 = arith.constant 1 : index
    %c7_95 = arith.constant 7 : index
    %191 = memref.load %arg4[%c1_94, %c7_95] : memref<4x12xf32, #tpu.memory_space<smem>>
    %192 = vector.broadcast %191 : f32 to vector<1x256xf32>
    %193 = arith.mulf %190, %192 : vector<1x256xf32>
    %194 = arith.addf %189, %193 : vector<1x256xf32>
    %195 = vector.extract_strided_slice %88 {offsets = [8, 0], sizes = [1, 256], strides = [1, 1]} : vector<12x256xf32> to vector<1x256xf32>
    %c1_96 = arith.constant 1 : index
    %c8_97 = arith.constant 8 : index
    %196 = memref.load %arg4[%c1_96, %c8_97] : memref<4x12xf32, #tpu.memory_space<smem>>
    %197 = vector.broadcast %196 : f32 to vector<1x256xf32>
    %198 = arith.mulf %195, %197 : vector<1x256xf32>
    %199 = arith.addf %194, %198 : vector<1x256xf32>
    %200 = vector.extract_strided_slice %88 {offsets = [9, 0], sizes = [1, 256], strides = [1, 1]} : vector<12x256xf32> to vector<1x256xf32>
    %c1_98 = arith.constant 1 : index
    %c9_99 = arith.constant 9 : index
    %201 = memref.load %arg4[%c1_98, %c9_99] : memref<4x12xf32, #tpu.memory_space<smem>>
    %202 = vector.broadcast %201 : f32 to vector<1x256xf32>
    %203 = arith.mulf %200, %202 : vector<1x256xf32>
    %204 = arith.addf %199, %203 : vector<1x256xf32>
    %205 = vector.extract_strided_slice %88 {offsets = [10, 0], sizes = [1, 256], strides = [1, 1]} : vector<12x256xf32> to vector<1x256xf32>
    %c1_100 = arith.constant 1 : index
    %c10_101 = arith.constant 10 : index
    %206 = memref.load %arg4[%c1_100, %c10_101] : memref<4x12xf32, #tpu.memory_space<smem>>
    %207 = vector.broadcast %206 : f32 to vector<1x256xf32>
    %208 = arith.mulf %205, %207 : vector<1x256xf32>
    %209 = arith.addf %204, %208 : vector<1x256xf32>
    %210 = vector.extract_strided_slice %88 {offsets = [11, 0], sizes = [1, 256], strides = [1, 1]} : vector<12x256xf32> to vector<1x256xf32>
    %c1_102 = arith.constant 1 : index
    %c11_103 = arith.constant 11 : index
    %211 = memref.load %arg4[%c1_102, %c11_103] : memref<4x12xf32, #tpu.memory_space<smem>>
    %212 = vector.broadcast %211 : f32 to vector<1x256xf32>
    %213 = arith.mulf %210, %212 : vector<1x256xf32>
    %214 = arith.addf %209, %213 : vector<1x256xf32>
    %c1_104 = arith.constant 1 : index
    %215 = memref.load %arg5[%c1_104] : memref<4xf32, #tpu.memory_space<smem>>
    %216 = vector.broadcast %215 : f32 to vector<1x256xf32>
    %217 = arith.addf %214, %216 : vector<1x256xf32>
    %cst_105 = arith.constant 0.000000e+00 : f32
    %218 = vector.broadcast %cst_105 : f32 to vector<1x256xf32>
    %219 = arith.maximumf %217, %218 : vector<1x256xf32>
    %c1_106 = arith.constant 1 : index
    %220 = memref.load %arg6[%c1_106] : memref<4xf32, #tpu.memory_space<smem>>
    %221 = vector.broadcast %220 : f32 to vector<1x256xf32>
    %222 = arith.mulf %219, %221 : vector<1x256xf32>
    %223 = arith.addf %155, %222 : vector<1x256xf32>
    %224 = vector.extract_strided_slice %88 {offsets = [0, 0], sizes = [1, 256], strides = [1, 1]} : vector<12x256xf32> to vector<1x256xf32>
    %c2_107 = arith.constant 2 : index
    %c0_108 = arith.constant 0 : index
    %225 = memref.load %arg4[%c2_107, %c0_108] : memref<4x12xf32, #tpu.memory_space<smem>>
    %226 = vector.broadcast %225 : f32 to vector<1x256xf32>
    %227 = arith.mulf %224, %226 : vector<1x256xf32>
    %228 = vector.extract_strided_slice %88 {offsets = [1, 0], sizes = [1, 256], strides = [1, 1]} : vector<12x256xf32> to vector<1x256xf32>
    %c2_109 = arith.constant 2 : index
    %c1_110 = arith.constant 1 : index
    %229 = memref.load %arg4[%c2_109, %c1_110] : memref<4x12xf32, #tpu.memory_space<smem>>
    %230 = vector.broadcast %229 : f32 to vector<1x256xf32>
    %231 = arith.mulf %228, %230 : vector<1x256xf32>
    %232 = arith.addf %227, %231 : vector<1x256xf32>
    %233 = vector.extract_strided_slice %88 {offsets = [2, 0], sizes = [1, 256], strides = [1, 1]} : vector<12x256xf32> to vector<1x256xf32>
    %c2_111 = arith.constant 2 : index
    %c2_112 = arith.constant 2 : index
    %234 = memref.load %arg4[%c2_111, %c2_112] : memref<4x12xf32, #tpu.memory_space<smem>>
    %235 = vector.broadcast %234 : f32 to vector<1x256xf32>
    %236 = arith.mulf %233, %235 : vector<1x256xf32>
    %237 = arith.addf %232, %236 : vector<1x256xf32>
    %238 = vector.extract_strided_slice %88 {offsets = [3, 0], sizes = [1, 256], strides = [1, 1]} : vector<12x256xf32> to vector<1x256xf32>
    %c2_113 = arith.constant 2 : index
    %c3_114 = arith.constant 3 : index
    %239 = memref.load %arg4[%c2_113, %c3_114] : memref<4x12xf32, #tpu.memory_space<smem>>
    %240 = vector.broadcast %239 : f32 to vector<1x256xf32>
    %241 = arith.mulf %238, %240 : vector<1x256xf32>
    %242 = arith.addf %237, %241 : vector<1x256xf32>
    %243 = vector.extract_strided_slice %88 {offsets = [4, 0], sizes = [1, 256], strides = [1, 1]} : vector<12x256xf32> to vector<1x256xf32>
    %c2_115 = arith.constant 2 : index
    %c4_116 = arith.constant 4 : index
    %244 = memref.load %arg4[%c2_115, %c4_116] : memref<4x12xf32, #tpu.memory_space<smem>>
    %245 = vector.broadcast %244 : f32 to vector<1x256xf32>
    %246 = arith.mulf %243, %245 : vector<1x256xf32>
    %247 = arith.addf %242, %246 : vector<1x256xf32>
    %248 = vector.extract_strided_slice %88 {offsets = [5, 0], sizes = [1, 256], strides = [1, 1]} : vector<12x256xf32> to vector<1x256xf32>
    %c2_117 = arith.constant 2 : index
    %c5_118 = arith.constant 5 : index
    %249 = memref.load %arg4[%c2_117, %c5_118] : memref<4x12xf32, #tpu.memory_space<smem>>
    %250 = vector.broadcast %249 : f32 to vector<1x256xf32>
    %251 = arith.mulf %248, %250 : vector<1x256xf32>
    %252 = arith.addf %247, %251 : vector<1x256xf32>
    %253 = vector.extract_strided_slice %88 {offsets = [6, 0], sizes = [1, 256], strides = [1, 1]} : vector<12x256xf32> to vector<1x256xf32>
    %c2_119 = arith.constant 2 : index
    %c6_120 = arith.constant 6 : index
    %254 = memref.load %arg4[%c2_119, %c6_120] : memref<4x12xf32, #tpu.memory_space<smem>>
    %255 = vector.broadcast %254 : f32 to vector<1x256xf32>
    %256 = arith.mulf %253, %255 : vector<1x256xf32>
    %257 = arith.addf %252, %256 : vector<1x256xf32>
    %258 = vector.extract_strided_slice %88 {offsets = [7, 0], sizes = [1, 256], strides = [1, 1]} : vector<12x256xf32> to vector<1x256xf32>
    %c2_121 = arith.constant 2 : index
    %c7_122 = arith.constant 7 : index
    %259 = memref.load %arg4[%c2_121, %c7_122] : memref<4x12xf32, #tpu.memory_space<smem>>
    %260 = vector.broadcast %259 : f32 to vector<1x256xf32>
    %261 = arith.mulf %258, %260 : vector<1x256xf32>
    %262 = arith.addf %257, %261 : vector<1x256xf32>
    %263 = vector.extract_strided_slice %88 {offsets = [8, 0], sizes = [1, 256], strides = [1, 1]} : vector<12x256xf32> to vector<1x256xf32>
    %c2_123 = arith.constant 2 : index
    %c8_124 = arith.constant 8 : index
    %264 = memref.load %arg4[%c2_123, %c8_124] : memref<4x12xf32, #tpu.memory_space<smem>>
    %265 = vector.broadcast %264 : f32 to vector<1x256xf32>
    %266 = arith.mulf %263, %265 : vector<1x256xf32>
    %267 = arith.addf %262, %266 : vector<1x256xf32>
    %268 = vector.extract_strided_slice %88 {offsets = [9, 0], sizes = [1, 256], strides = [1, 1]} : vector<12x256xf32> to vector<1x256xf32>
    %c2_125 = arith.constant 2 : index
    %c9_126 = arith.constant 9 : index
    %269 = memref.load %arg4[%c2_125, %c9_126] : memref<4x12xf32, #tpu.memory_space<smem>>
    %270 = vector.broadcast %269 : f32 to vector<1x256xf32>
    %271 = arith.mulf %268, %270 : vector<1x256xf32>
    %272 = arith.addf %267, %271 : vector<1x256xf32>
    %273 = vector.extract_strided_slice %88 {offsets = [10, 0], sizes = [1, 256], strides = [1, 1]} : vector<12x256xf32> to vector<1x256xf32>
    %c2_127 = arith.constant 2 : index
    %c10_128 = arith.constant 10 : index
    %274 = memref.load %arg4[%c2_127, %c10_128] : memref<4x12xf32, #tpu.memory_space<smem>>
    %275 = vector.broadcast %274 : f32 to vector<1x256xf32>
    %276 = arith.mulf %273, %275 : vector<1x256xf32>
    %277 = arith.addf %272, %276 : vector<1x256xf32>
    %278 = vector.extract_strided_slice %88 {offsets = [11, 0], sizes = [1, 256], strides = [1, 1]} : vector<12x256xf32> to vector<1x256xf32>
    %c2_129 = arith.constant 2 : index
    %c11_130 = arith.constant 11 : index
    %279 = memref.load %arg4[%c2_129, %c11_130] : memref<4x12xf32, #tpu.memory_space<smem>>
    %280 = vector.broadcast %279 : f32 to vector<1x256xf32>
    %281 = arith.mulf %278, %280 : vector<1x256xf32>
    %282 = arith.addf %277, %281 : vector<1x256xf32>
    %c2_131 = arith.constant 2 : index
    %283 = memref.load %arg5[%c2_131] : memref<4xf32, #tpu.memory_space<smem>>
    %284 = vector.broadcast %283 : f32 to vector<1x256xf32>
    %285 = arith.addf %282, %284 : vector<1x256xf32>
    %cst_132 = arith.constant 0.000000e+00 : f32
    %286 = vector.broadcast %cst_132 : f32 to vector<1x256xf32>
    %287 = arith.maximumf %285, %286 : vector<1x256xf32>
    %c2_133 = arith.constant 2 : index
    %288 = memref.load %arg6[%c2_133] : memref<4xf32, #tpu.memory_space<smem>>
    %289 = vector.broadcast %288 : f32 to vector<1x256xf32>
    %290 = arith.mulf %287, %289 : vector<1x256xf32>
    %291 = arith.addf %223, %290 : vector<1x256xf32>
    %292 = vector.extract_strided_slice %88 {offsets = [0, 0], sizes = [1, 256], strides = [1, 1]} : vector<12x256xf32> to vector<1x256xf32>
    %c3_134 = arith.constant 3 : index
    %c0_135 = arith.constant 0 : index
    %293 = memref.load %arg4[%c3_134, %c0_135] : memref<4x12xf32, #tpu.memory_space<smem>>
    %294 = vector.broadcast %293 : f32 to vector<1x256xf32>
    %295 = arith.mulf %292, %294 : vector<1x256xf32>
    %296 = vector.extract_strided_slice %88 {offsets = [1, 0], sizes = [1, 256], strides = [1, 1]} : vector<12x256xf32> to vector<1x256xf32>
    %c3_136 = arith.constant 3 : index
    %c1_137 = arith.constant 1 : index
    %297 = memref.load %arg4[%c3_136, %c1_137] : memref<4x12xf32, #tpu.memory_space<smem>>
    %298 = vector.broadcast %297 : f32 to vector<1x256xf32>
    %299 = arith.mulf %296, %298 : vector<1x256xf32>
    %300 = arith.addf %295, %299 : vector<1x256xf32>
    %301 = vector.extract_strided_slice %88 {offsets = [2, 0], sizes = [1, 256], strides = [1, 1]} : vector<12x256xf32> to vector<1x256xf32>
    %c3_138 = arith.constant 3 : index
    %c2_139 = arith.constant 2 : index
    %302 = memref.load %arg4[%c3_138, %c2_139] : memref<4x12xf32, #tpu.memory_space<smem>>
    %303 = vector.broadcast %302 : f32 to vector<1x256xf32>
    %304 = arith.mulf %301, %303 : vector<1x256xf32>
    %305 = arith.addf %300, %304 : vector<1x256xf32>
    %306 = vector.extract_strided_slice %88 {offsets = [3, 0], sizes = [1, 256], strides = [1, 1]} : vector<12x256xf32> to vector<1x256xf32>
    %c3_140 = arith.constant 3 : index
    %c3_141 = arith.constant 3 : index
    %307 = memref.load %arg4[%c3_140, %c3_141] : memref<4x12xf32, #tpu.memory_space<smem>>
    %308 = vector.broadcast %307 : f32 to vector<1x256xf32>
    %309 = arith.mulf %306, %308 : vector<1x256xf32>
    %310 = arith.addf %305, %309 : vector<1x256xf32>
    %311 = vector.extract_strided_slice %88 {offsets = [4, 0], sizes = [1, 256], strides = [1, 1]} : vector<12x256xf32> to vector<1x256xf32>
    %c3_142 = arith.constant 3 : index
    %c4_143 = arith.constant 4 : index
    %312 = memref.load %arg4[%c3_142, %c4_143] : memref<4x12xf32, #tpu.memory_space<smem>>
    %313 = vector.broadcast %312 : f32 to vector<1x256xf32>
    %314 = arith.mulf %311, %313 : vector<1x256xf32>
    %315 = arith.addf %310, %314 : vector<1x256xf32>
    %316 = vector.extract_strided_slice %88 {offsets = [5, 0], sizes = [1, 256], strides = [1, 1]} : vector<12x256xf32> to vector<1x256xf32>
    %c3_144 = arith.constant 3 : index
    %c5_145 = arith.constant 5 : index
    %317 = memref.load %arg4[%c3_144, %c5_145] : memref<4x12xf32, #tpu.memory_space<smem>>
    %318 = vector.broadcast %317 : f32 to vector<1x256xf32>
    %319 = arith.mulf %316, %318 : vector<1x256xf32>
    %320 = arith.addf %315, %319 : vector<1x256xf32>
    %321 = vector.extract_strided_slice %88 {offsets = [6, 0], sizes = [1, 256], strides = [1, 1]} : vector<12x256xf32> to vector<1x256xf32>
    %c3_146 = arith.constant 3 : index
    %c6_147 = arith.constant 6 : index
    %322 = memref.load %arg4[%c3_146, %c6_147] : memref<4x12xf32, #tpu.memory_space<smem>>
    %323 = vector.broadcast %322 : f32 to vector<1x256xf32>
    %324 = arith.mulf %321, %323 : vector<1x256xf32>
    %325 = arith.addf %320, %324 : vector<1x256xf32>
    %326 = vector.extract_strided_slice %88 {offsets = [7, 0], sizes = [1, 256], strides = [1, 1]} : vector<12x256xf32> to vector<1x256xf32>
    %c3_148 = arith.constant 3 : index
    %c7_149 = arith.constant 7 : index
    %327 = memref.load %arg4[%c3_148, %c7_149] : memref<4x12xf32, #tpu.memory_space<smem>>
    %328 = vector.broadcast %327 : f32 to vector<1x256xf32>
    %329 = arith.mulf %326, %328 : vector<1x256xf32>
    %330 = arith.addf %325, %329 : vector<1x256xf32>
    %331 = vector.extract_strided_slice %88 {offsets = [8, 0], sizes = [1, 256], strides = [1, 1]} : vector<12x256xf32> to vector<1x256xf32>
    %c3_150 = arith.constant 3 : index
    %c8_151 = arith.constant 8 : index
    %332 = memref.load %arg4[%c3_150, %c8_151] : memref<4x12xf32, #tpu.memory_space<smem>>
    %333 = vector.broadcast %332 : f32 to vector<1x256xf32>
    %334 = arith.mulf %331, %333 : vector<1x256xf32>
    %335 = arith.addf %330, %334 : vector<1x256xf32>
    %336 = vector.extract_strided_slice %88 {offsets = [9, 0], sizes = [1, 256], strides = [1, 1]} : vector<12x256xf32> to vector<1x256xf32>
    %c3_152 = arith.constant 3 : index
    %c9_153 = arith.constant 9 : index
    %337 = memref.load %arg4[%c3_152, %c9_153] : memref<4x12xf32, #tpu.memory_space<smem>>
    %338 = vector.broadcast %337 : f32 to vector<1x256xf32>
    %339 = arith.mulf %336, %338 : vector<1x256xf32>
    %340 = arith.addf %335, %339 : vector<1x256xf32>
    %341 = vector.extract_strided_slice %88 {offsets = [10, 0], sizes = [1, 256], strides = [1, 1]} : vector<12x256xf32> to vector<1x256xf32>
    %c3_154 = arith.constant 3 : index
    %c10_155 = arith.constant 10 : index
    %342 = memref.load %arg4[%c3_154, %c10_155] : memref<4x12xf32, #tpu.memory_space<smem>>
    %343 = vector.broadcast %342 : f32 to vector<1x256xf32>
    %344 = arith.mulf %341, %343 : vector<1x256xf32>
    %345 = arith.addf %340, %344 : vector<1x256xf32>
    %346 = vector.extract_strided_slice %88 {offsets = [11, 0], sizes = [1, 256], strides = [1, 1]} : vector<12x256xf32> to vector<1x256xf32>
    %c3_156 = arith.constant 3 : index
    %c11_157 = arith.constant 11 : index
    %347 = memref.load %arg4[%c3_156, %c11_157] : memref<4x12xf32, #tpu.memory_space<smem>>
    %348 = vector.broadcast %347 : f32 to vector<1x256xf32>
    %349 = arith.mulf %346, %348 : vector<1x256xf32>
    %350 = arith.addf %345, %349 : vector<1x256xf32>
    %c3_158 = arith.constant 3 : index
    %351 = memref.load %arg5[%c3_158] : memref<4xf32, #tpu.memory_space<smem>>
    %352 = vector.broadcast %351 : f32 to vector<1x256xf32>
    %353 = arith.addf %350, %352 : vector<1x256xf32>
    %cst_159 = arith.constant 0.000000e+00 : f32
    %354 = vector.broadcast %cst_159 : f32 to vector<1x256xf32>
    %355 = arith.maximumf %353, %354 : vector<1x256xf32>
    %c3_160 = arith.constant 3 : index
    %356 = memref.load %arg6[%c3_160] : memref<4xf32, #tpu.memory_space<smem>>
    %357 = vector.broadcast %356 : f32 to vector<1x256xf32>
    %358 = arith.mulf %355, %357 : vector<1x256xf32>
    %359 = arith.addf %291, %358 : vector<1x256xf32>
    %c0_161 = arith.constant 0 : index
    %360 = memref.load %arg7[%c0_161] : memref<1xf32, #tpu.memory_space<smem>>
    %361 = vector.broadcast %360 : f32 to vector<1x256xf32>
    %362 = arith.addf %359, %361 : vector<1x256xf32>
    %c0_162 = arith.constant 0 : index
    %c0_163 = arith.constant 0 : index
    %363 = vector.load %arg8[%c0_162, %c0_163] : memref<1x256xf32, #tpu.memory_space<vmem>>, vector<1x256xf32>
    tpu.vector_store %arg8[%c0_162, %c0_163], %362 {strides = array<i32>} : memref<1x256xf32, #tpu.memory_space<vmem>>, vector<1x256xf32>,
    return
  }
  func.func @transform_0(%arg0: i32) -> (i32, i32) {
    %c0_i32 = arith.constant 0 : i32
    %c0_i32_0 = arith.constant 0 : i32
    return %c0_i32, %arg0 : i32, i32
  }
  func.func @transform_1(%arg0: i32) -> (i32, i32, i32) {
    %c0_i32 = arith.constant 0 : i32
    %c0_i32_0 = arith.constant 0 : i32
    %c0_i32_1 = arith.constant 0 : i32
    %c0_i32_2 = arith.constant 0 : i32
    return %c0_i32, %c0_i32_0, %c0_i32_1 : i32, i32, i32
  }
  func.func @transform_2(%arg0: i32) -> (i32, i32, i32) {
    %c0_i32 = arith.constant 0 : i32
    %c0_i32_0 = arith.constant 0 : i32
    %c0_i32_1 = arith.constant 0 : i32
    %c0_i32_2 = arith.constant 0 : i32
    return %c0_i32, %c0_i32_0, %c0_i32_1 : i32, i32, i32
  }
  func.func @transform_3(%arg0: i32) -> (i32, i32) {
    %c0_i32 = arith.constant 0 : i32
    %c0_i32_0 = arith.constant 0 : i32
    %c0_i32_1 = arith.constant 0 : i32
    return %c0_i32, %c0_i32_0 : i32, i32
  }
  func.func @transform_4(%arg0: i32) -> i32 {
    %c0_i32 = arith.constant 0 : i32
    %c0_i32_0 = arith.constant 0 : i32
    return %c0_i32 : i32
  }
  func.func @transform_5(%arg0: i32) -> i32 {
    %c0_i32 = arith.constant 0 : i32
    %c0_i32_0 = arith.constant 0 : i32
    return %c0_i32 : i32
  }
  func.func @transform_6(%arg0: i32) -> i32 {
    %c0_i32 = arith.constant 0 : i32
    %c0_i32_0 = arith.constant 0 : i32
    return %c0_i32 : i32
  }
  func.func @transform_7(%arg0: i32) -> (i32, i32) {
    %c0_i32 = arith.constant 0 : i32
    %c0_i32_0 = arith.constant 0 : i32
    return %c0_i32, %arg0 : i32, i32
  }
}

</mosaic_0001>

<bundles_post_ra>
// kernel: distance_spherical_forward.1
= control target key start
LH: loop header
LB: loop body
LE: loop exit
PB: predicated region body
PF: predicated region fallthrough
CT: control target
= control target key end

     0   :  { %s3683_s0 = inlined_call_operand.vmem [shape: f32[12,256], index: 0, kind: input, shape index: {}]   ;;  %s3684_s1 = inlined_call_operand.vmem [shape: f32[8,192,192], index: 1, kind: input, shape index: {}]   ;;  %s3685_s2 = inlined_call_operand.vmem [shape: f32[8,192,1], index: 2, kind: input, shape index: {}]   ;;  %s3686_s3 = inlined_call_operand.vmem [shape: f32[4,12], index: 3, kind: input, shape index: {}]   ;;  %s3687_s4 = inlined_call_operand.vmem [shape: f32[4], index: 4, kind: input, shape index: {}]   ;;  %s3688_s5 = inlined_call_operand.vmem [shape: f32[4], index: 5, kind: input, shape index: {}]   ;;  %s3689_s6 = inlined_call_operand.<no memory space> [shape: f32[1], index: 6, kind: input, shape index: {}]   ;;  %s3690_s7 = inlined_call_operand.hbm [shape: f32[1,256], index: 7, kind: output, shape index: {}]  }
   0x1   :  { %3712 = sst [smem:[#allocation25_spill]] %s3689_s6 }
   0x2   :  { %3713 = sst [smem:[#allocation26_spill]] %s3690_s7 }
   0x3   :  { %13 = vsyncpa [#allocation5], 0 }
   0x4   :  { %14 = vsyncpa [#allocation7], 0  ;;  %s38_s26 = sshll.u32 %s3687_s4, 4  ;;  %s39_s26 = int_to_ptr.vmem [resolvable:$true] %s38_s26 }
   0x5   :  { %15 = vsyncpa [#allocation4], 0  ;;  %s28_s29 = sshll.u32 %s3686_s3, 4  ;;  %s2408_s30 = scalar_lea.vmem %s39_s26, 16  ;;  %s29_s29 = int_to_ptr.vmem [resolvable:$true] %s28_s29 }
   0x6   :  { %p2409_p0 = scmp.ne.s32.totalorder %s39_s26, %s2408_s30  ;;  %p2413_p1 = scmp.lt.s32.totalorder %s39_s26, %s39_s26 }
   0x7   :  { %p2414_p2 = scmp.lt.s32.totalorder %s2408_s30, %s2408_s30 }
   0x9   :  { %p2415_p3 = por %p2414_p2, %p2413_p1 }
   0xb   :  { %p2416_p4 = pnand %p2415_p3, %p2409_p0 }
   0xd   :  { %2419 = shalt.err (!%p2416_p4)
}
   0xe   :  { %s2470_s8 = smov [#allocation6]   ;;  %s2420_s9 = scalar_lea.vmem %s29_s29, 64 }
   0xf   :  { %41 = dma.vmem_to_smem %s39_s26, 16, %s2470_s8, [#allocation7]  }
  0x10   :  { %p2421_p5 = scmp.ne.s32.totalorder %s29_s29, %s2420_s9  ;;  %p2425_p6 = scmp.lt.s32.totalorder %s29_s29, %s29_s29 }
  0x11   :  { %p2426_p7 = scmp.lt.s32.totalorder %s2420_s9, %s2420_s9 }
  0x13   :  { %p2427_p8 = por %p2426_p7, %p2425_p6 }
  0x15   :  { %p2428_p9 = pnand %p2427_p8, %p2421_p5 }
  0x17   :  { %2431 = shalt.err (!%p2428_p9)
}
  0x18   :  { %s2471_s4 = smov [#allocation3]   ;;  %s48_s11 = sshll.u32 %s3688_s5, 4  ;;  %s49_s11 = int_to_ptr.vmem [resolvable:$true] %s48_s11 }
  0x19   :  { %31 = dma.vmem_to_smem %s29_s29, 64, %s2471_s4, [#allocation5]  }
  0x1a   :  { %s2432_s12 = scalar_lea.vmem %s49_s11, 16  ;;  %p2437_p11 = scmp.lt.s32.totalorder %s49_s11, %s49_s11 }
  0x1b   :  { %p2433_p10 = scmp.ne.s32.totalorder %s49_s11, %s2432_s12  ;;  %p2438_p12 = scmp.lt.s32.totalorder %s2432_s12, %s2432_s12 }
  0x1d   :  { %p2439_p13 = por %p2438_p12, %p2437_p11 }
  0x1f   :  { %p2440_p0 = pnand %p2439_p13, %p2433_p10 }
  0x21   :  { %2443 = shalt.err (!%p2440_p0)
}
  0x22   :  { %s2472_s13 = smov [#allocation8]  }
  0x23   :  { %51 = dma.vmem_to_smem %s49_s11, 16, %s2472_s13, [#allocation7]  }
  0x24   :  { %2464 = dma.done.wait [#allocation5], 64  }
  0x25   :  { %2465 = vsyncadd [#allocation5], 4294967232 }
  0x26   :  { %2466 = dma.done.wait [#allocation7], 32  }
  0x27   :  { %2467 = vsyncadd [#allocation7], 4294967264 }
  0x28   :  { %63 = sfence }
  0x29   :  { %v76_v0 = vld [vmem:[%s3685_s2 + $0x10] sm:$0xff]  ;;  %v75_v1 = vld [vmem:[%s3685_s2 + $0x8] sm:$0xff]  ;;  %v2473_v3 = vmov 0   ;;  %v68_v4 = vld [vmem:[%s3683_s0 + $0x18] sm:$0xf]  ;;  %vm101_vm0 = vcmask 1045504  }
  0x2a   :  { %v66_v2 = vld [vmem:[%s3683_s0 + $0x8] sm:$0xff]  ;;  %2407 = vset.pattern.permute.xlu1 %v2473_v3  ;;  %2406 = vset.pattern.permute.xlu0 %v2473_v3  ;;  %v65_v5 = vld [vmem:[%s3683_s0] sm:$0xff]  ;;  %v67_v6 = vld [vmem:[%s3683_s0 + $0x10] sm:$0xf]  ;;  %vm94_vm1 = vcmask 97280   ;;  %vm226_vm2 = vcmask 1043456  }
  0x2b   :  { %91 = vperm.xlu0 %2406, %v76_v0   ;;  %86 = vperm.xlu1 %2407, %v75_v1   ;;  %v78_v7 = vpack.c.bf16 %v68_v4, %v66_v2  ;;  %v77_v8 = vpack.c.bf16 %v67_v6, %v65_v5  ;;  %v69_v9 = vld [vmem:[%s3684_s1] sm:$0xff]  ;;  %v70_v12 = vld [vmem:[%s3684_s1 + $0x10] sm:$0xff]  ;;  %v2181_v16 = vld [vmem:[%s3685_s2 + $0xe8] sm:$0xff]  ;;  %vm216_vm3 = vcmask 195584   ;;  %vm406_vm4 = vcmask 392192   ;;  %s3195_s15 = sld [smem:[#allocation3]] }
  0x2c   :  { %140 = vmatprep.mubr.bf16.mxu0 %v2473_v3  ;;  %v2180_v10 = vld [vmem:[%s3685_s2 + $0xe0] sm:$0xff]  ;;  %265 = vmatprep.mubr.bf16.mxu1 %v2473_v3  ;;  %v72_v14 = vpack.c.bf16 %v70_v12, %v69_v9  ;;  %v2178_v15 = vld [vmem:[%s3685_s2 + $0xd0] sm:$0xff]  ;;  %v2179_v19 = vld [vmem:[%s3685_s2 + $0xd8] sm:$0xff]  ;;  %vm736_vm5 = vcmask 785408   ;;  %vm1108_vm6 = vcmask 523264   ;;  %s3197_s5 = sld [smem:[#allocation3 + $0x1]] }
  0x2d   :  { %v74_v11 = vld [vmem:[%s3685_s2] sm:$0xff]  ;;  %2167 = vmatprep.subr.msk.bf16.mxu0 %vm101_vm0, %v78_v7  ;;  %v103_v13 = vsel %vm101_vm0, %v77_v8, 0  ;;  %v2208_v21 = vld [vmem:[%s3685_s2 + $0x1d0] sm:$0xff]  ;;  %v2177_v22 = vld [vmem:[%s3685_s2 + $0xc8] sm:$0xff]  ;;  %s3199_s16 = sld [smem:[#allocation3 + $0x2]] }
  0x2e   :  { %123 = vmatpush1.bf16.msra.mxu0 %v103_v13  ;;  %v71_v17 = vld [vmem:[%s3684_s1 + $0x20] sm:$0xff]  ;;  %v2209_v24 = vld [vmem:[%s3685_s2 + $0x1d8] sm:$0xff]  ;;  %v2204_v25 = vld [vmem:[%s3685_s2 + $0x1b0] sm:$0xff]  ;;  %s3201_s17 = sld [smem:[#allocation3 + $0x3]] }
  0x2f   :  { %208 = vperm.xlu1 %2407, %v2180_v10   ;;  %81 = vperm.xlu0 %2406, %v74_v11   ;;  %v2176_v18 = vld [vmem:[%s3685_s2 + $0xc0] sm:$0xff]  ;;  %v73_v20 = vpack.c.bf16 %v71_v17, %v71_v17  ;;  %v2207_v26 = vld [vmem:[%s3685_s2 + $0x1c8] sm:$0xff]  ;;  %v2205_v28 = vld [vmem:[%s3685_s2 + $0x1b8] sm:$0xff]  ;;  %s3203_s18 = sld [smem:[#allocation3 + $0x4]] }
  0x30   :  { %v2206_v23 = vld [vmem:[%s3685_s2 + $0x1c0] sm:$0xff]  ;;  %v2200_v29 = vld [vmem:[%s3685_s2 + $0x190] sm:$0xff]  ;;  %v2203_v30 = vld [vmem:[%s3685_s2 + $0x1a8] sm:$0xff]  ;;  %s3205_s19 = sld [smem:[#allocation3 + $0x5]] }
  0x31   :  { %2168 = vmatmul.mubr.msk.bf16.vlgmr.msra.gmra.mxu0 %vm94_vm1, %v72_v14  ;;  %v2202_v27 = vld [vmem:[%s3685_s2 + $0x1a0] sm:$0xff]  ;;  %v2201_v32 = vld [vmem:[%s3685_s2 + $0x198] sm:$0xff]  ;;  %v2254_v33 = vld [vmem:[%s3685_s2 + $0x2b0] sm:$0xff]  ;;  %3714 = sst [smem:[#allocation13_spill]] %s3195_s15 }
  0x32   :  { %150 = vmatprep.mubr.bf16.mxu0 %v2473_v3  ;;  %v2198_v31 = vld [vmem:[%s3685_s2 + $0x180] sm:$0xff]  ;;  %v2199_v34 = vld [vmem:[%s3685_s2 + $0x188] sm:$0xff]  ;;  %v2255_v36 = vld [vmem:[%s3685_s2 + $0x2b8] sm:$0xff]  ;;  %s3207_s20 = sld [smem:[#allocation3 + $0x6]] }
  0x33   :  { %198 = vperm.xlu1 %2407, %v2178_v15   ;;  %213 = vperm.xlu0 %2406, %v2181_v16   ;;  %v2252_v35 = vld [vmem:[%s3685_s2 + $0x2a0] sm:$0xff]  ;;  %v2250_v37 = vld [vmem:[%s3685_s2 + $0x290] sm:$0xff]  ;;  %v2253_v38 = vld [vmem:[%s3685_s2 + $0x2a8] sm:$0xff]  ;;  %s3211_s21 = sld [smem:[#allocation3 + $0x80]] }
  0x34   :  { %v2248_v39 = vld [vmem:[%s3685_s2 + $0x280] sm:$0xff]  ;;  %v2251_v40 = vld [vmem:[%s3685_s2 + $0x298] sm:$0xff]  ;;  %v2246_v41 = vld [vmem:[%s3685_s2 + $0x270] sm:$0xff]  ;;  %s3213_s22 = sld [smem:[#allocation3 + $0x8]] }
  0x35   :  { %v2249_v42 = vld [vmem:[%s3685_s2 + $0x288] sm:$0xff]  ;;  %v2244_v43 = vld [vmem:[%s3685_s2 + $0x260] sm:$0xff]  ;;  %v2247_v44 = vld [vmem:[%s3685_s2 + $0x278] sm:$0xff]  ;;  %s3215_s23 = sld [smem:[#allocation3 + $0x9]] }
  0x36   :  { %v2242_v45 = vld [vmem:[%s3685_s2 + $0x250] sm:$0xff]  ;;  %v2245_v46 = vld [vmem:[%s3685_s2 + $0x268] sm:$0xff]  ;;  %v2240_v47 = vld [vmem:[%s3685_s2 + $0x240] sm:$0xff]  ;;  %s3217_s24 = sld [smem:[#allocation3 + $0xa]] }
  0x37   :  { %188 = vperm.xlu1 %2407, %v2176_v18   ;;  %203 = vperm.xlu0 %2406, %v2179_v19   ;;  %v2243_v48 = vld [vmem:[%s3685_s2 + $0x258] sm:$0xff]  ;;  %v2262_v49 = vld [vmem:[%s3685_s2 + $0x2f0] sm:$0xff]  ;;  %v2241_v50 = vld [vmem:[%s3685_s2 + $0x248] sm:$0xff]  ;;  %s3219_s25 = sld [smem:[#allocation3 + $0xb]] }
  0x38   :  { %v2260_v51 = vld [vmem:[%s3685_s2 + $0x2e0] sm:$0xff]  ;;  %v2263_v52 = vld [vmem:[%s3685_s2 + $0x2f8] sm:$0xff]  ;;  %v2258_v53 = vld [vmem:[%s3685_s2 + $0x2d0] sm:$0xff]  ;;  %3715 = sst [smem:[#allocation14_spill]] %s3207_s20 }
  0x39   :  { %2169 = vmatmul.mubr.msk.bf16.gmra.mxu0 %vm94_vm1, %v73_v20  ;;  %v2261_v54 = vld [vmem:[%s3685_s2 + $0x2e8] sm:$0xff]  ;;  %v2256_v55 = vld [vmem:[%s3685_s2 + $0x2c0] sm:$0xff]  ;;  %v2259_v56 = vld [vmem:[%s3685_s2 + $0x2d8] sm:$0xff]  ;;  %3717 = sst [smem:[#allocation16_spill]] %s3211_s21 }
  0x3a   :  { %457 = vmatprep.mubr.bf16.mxu0 %v2473_v3  ;;  %v2310_v57 = vld [vmem:[%s3685_s2 + $0x350] sm:$0xff]  ;;  %v2257_v58 = vld [vmem:[%s3685_s2 + $0x2c8] sm:$0xff]  ;;  %v2308_v59 = vld [vmem:[%s3685_s2 + $0x340] sm:$0xff]  ;;  %s3221_s26 = sld [smem:[#allocation3 + $0x81]] }
  0x3b   :  { %398 = vperm.xlu1 %2407, %v2208_v21   ;;  %193 = vperm.xlu0 %2406, %v2177_v22   ;;  %v2311_v60 = vld [vmem:[%s3685_s2 + $0x358] sm:$0xff]  ;;  %v2306_v61 = vld [vmem:[%s3685_s2 + $0x330] sm:$0xff]  ;;  %v2309_v62 = vld [vmem:[%s3685_s2 + $0x348] sm:$0xff]  ;;  %s3223_s27 = sld [smem:[#allocation3 + $0x82]] }
  0x3c   :  { %v2304_v63 = vld [vmem:[%s3685_s2 + $0x320] sm:$0xff]  ;;  %v2307_v0 = vld [vmem:[%s3685_s2 + $0x338] sm:$0xff]  ;;  %v2302_v1 = vld [vmem:[%s3685_s2 + $0x310] sm:$0xff]  ;;  %s3227_s28 = sld [smem:[#allocation3 + $0x84]] }
  0x3d   :  { %v2305_v2 = vld [vmem:[%s3685_s2 + $0x328] sm:$0xff]  ;;  %v2300_v4 = vld [vmem:[%s3685_s2 + $0x300] sm:$0xff]  ;;  %v2303_v5 = vld [vmem:[%s3685_s2 + $0x318] sm:$0xff]  ;;  %3718 = sst [smem:[#allocation17_spill]] %s3219_s25 }
  0x3e   :  { %v2328_v6 = vld [vmem:[%s3685_s2 + $0x3e0] sm:$0xff]  ;;  %v2301_v7 = vld [vmem:[%s3685_s2 + $0x308] sm:$0xff]  ;;  %v2326_v8 = vld [vmem:[%s3685_s2 + $0x3d0] sm:$0xff]  ;;  %s3229_s29 = sld [smem:[#allocation3 + $0x85]] }
  0x3f   :  { %388 = vperm.xlu1 %2407, %v2206_v23   ;;  %403 = vperm.xlu0 %2406, %v2209_v24   ;;  %v2329_v9 = vld [vmem:[%s3685_s2 + $0x3e8] sm:$0xff]  ;;  %v2324_v10 = vld [vmem:[%s3685_s2 + $0x3c0] sm:$0xff]  ;;  %v2327_v11 = vld [vmem:[%s3685_s2 + $0x3d8] sm:$0xff]  ;;  %s3231_s30 = sld [smem:[#allocation3 + $0x86]] }
  0x40   :  { %v2338_v12 = vld [vmem:[%s3685_s2 + $0x490] sm:$0xff]  ;;  %v2325_v13 = vld [vmem:[%s3685_s2 + $0x3c8] sm:$0xff]  ;;  %v2336_v15 = vld [vmem:[%s3685_s2 + $0x480] sm:$0xff]  ;;  %s3233_s8 = sld [smem:[#allocation3 + $0x87]] }
  0x41   :  { %v2337_v14 = vld [vmem:[%s3685_s2 + $0x488] sm:$0xff]  ;;  %v2343_v17 = vld [vmem:[%s3685_s2 + $0x540] sm:$0xff]  ;;  %s3235_s0 = sld [smem:[#allocation3 + $0x88]] }
  0x42   :  { %v2344_v16 = vld [vmem:[%s3685_s2 + $0x548] sm:$0xf]  ;;  %s3225_s2 = sld [smem:[#allocation3 + $0x83]] }
  0x43   :  { %378 = vperm.xlu1 %2407, %v2204_v25   ;;  %393 = vperm.xlu0 %2406, %v2207_v26   ;;  %s3237_s9 = sld [smem:[#allocation3 + $0x89]] }
  0x44   :  { %s3239_s4 = sld [smem:[#allocation3 + $0x8a]] }
  0x45   :  { %s3241_s3 = sld [smem:[#allocation3 + $0x8b]] }
  0x46   :  { %s3243_s10 = sld [smem:[#allocation3 + $0x100]] }
  0x47   :  { %368 = vperm.xlu1 %2407, %v2202_v27   ;;  %383 = vperm.xlu0 %2406, %v2205_v28   ;;  %3719 = sst [smem:[#allocation18_spill]] %s3235_s0 }
  0x48   :  { %s3245_s11 = sld [smem:[#allocation6]] }
  0x49   :  { %s3247_s12 = sld [smem:[#allocation3 + $0x101]] }
  0x4a   :  { %s3249_s13 = sld [smem:[#allocation3 + $0x102]] }
  0x4b   :  { %358 = vperm.xlu1 %2407, %v2200_v29   ;;  %373 = vperm.xlu0 %2406, %v2203_v30   ;;  %3720 = sst [smem:[#allocation19_spill]] %s3241_s3 }
  0x4c   :  { %3721 = sst [smem:[#allocation20_spill]] %s3243_s10 }
  0x4d   :  { %s3251_s14 = sld [smem:[#allocation3 + $0x103]] }
  0x4e   :  { %3722 = sst [smem:[#allocation21_spill]] %s3245_s11 }
  0x4f   :  { %348 = vperm.xlu1 %2407, %v2198_v31   ;;  %363 = vperm.xlu0 %2406, %v2201_v32   ;;  %s3253_s7 = sld [smem:[#allocation8]] }
  0x50   :  { %3723 = sst [smem:[#allocation22_spill]] %s3249_s13 }
  0x51   :  { %s3255_s6 = sld [smem:[#allocation3 + $0x104]] }
  0x52   :  { %s3257_s3 = sld [smem:[#allocation3 + $0x105]] }
  0x53   :  { %688 = vperm.xlu1 %2407, %v2254_v33   ;;  %353 = vperm.xlu0 %2406, %v2199_v34   ;;  %s3259_s10 = sld [smem:[#allocation3 + $0x106]] }
  0x54   :  { %s3261_s11 = sld [smem:[#allocation3 + $0x107]] }
  0x55   :  { %3724 = sst [smem:[#allocation23_spill]] %s3253_s7 }
  0x56   :  { %s3264_s13 = sld [smem:[#allocation3 + $0x180]] }
  0x57   :  { %678 = vperm.xlu1 %2407, %v2252_v35   ;;  %693 = vperm.xlu0 %2406, %v2255_v36   ;;  %3725 = sst [smem:[#allocation24_spill]] %s3255_s6 }
  0x58   :  { %s3270_s6 = sld [smem:[#allocation6 + $0x1]] }
  0x5b   :  { %668 = vperm.xlu1 %2407, %v2250_v37   ;;  %683 = vperm.xlu0 %2406, %v2253_v38  }
  0x5f   :  { %658 = vperm.xlu1 %2407, %v2248_v39   ;;  %673 = vperm.xlu0 %2406, %v2251_v40  }
  0x63   :  { %648 = vperm.xlu1 %2407, %v2246_v41   ;;  %663 = vperm.xlu0 %2406, %v2249_v42  }
  0x67   :  { %638 = vperm.xlu1 %2407, %v2244_v43   ;;  %653 = vperm.xlu0 %2406, %v2247_v44  }
  0x6b   :  { %628 = vperm.xlu1 %2407, %v2242_v45   ;;  %643 = vperm.xlu0 %2406, %v2245_v46   ;;  %v2170_v45 = vld [vmem:[%s3684_s1 + $0x180] sm:$0xff]  ;;  %v2171_v46 = vld [vmem:[%s3684_s1 + $0x190] sm:$0xff] }
  0x6f   :  { %618 = vperm.xlu1 %2407, %v2240_v47   ;;  %633 = vperm.xlu0 %2406, %v2243_v48   ;;  %v172_v48 = vpack.c.bf16 %v2171_v46, %v2170_v45  ;;  %v2190_v46 = vld [vmem:[%s3684_s1 + $0x340] sm:$0xff] }
  0x73   :  { %728 = vperm.xlu1 %2407, %v2262_v49   ;;  %623 = vperm.xlu0 %2406, %v2241_v50   ;;  %v2172_v49 = vld [vmem:[%s3684_s1 + $0x1a0] sm:$0xff]  ;;  %v2173_v50 = vld [vmem:[%s3684_s1 + $0x1b0] sm:$0xff] }
  0x77   :  { %718 = vperm.xlu1 %2407, %v2260_v51   ;;  %733 = vperm.xlu0 %2406, %v2263_v52   ;;  %v173_v51 = vpack.c.bf16 %v2173_v50, %v2172_v49  ;;  %v2174_v52 = vld [vmem:[%s3684_s1 + $0x1c0] sm:$0xff]  ;;  %v2193_v50 = vld [vmem:[%s3684_s1 + $0x370] sm:$0xff] }
  0x78   :  { %v2192_v49 = vld [vmem:[%s3684_s1 + $0x360] sm:$0xff] }
  0x7b   :  { %708 = vperm.xlu1 %2407, %v2258_v53   ;;  %723 = vperm.xlu0 %2406, %v2261_v54   ;;  %v2175_v53 = vld [vmem:[%s3684_s1 + $0x1d0] sm:$0xff] }
  0x7c   :  { %v174_v54 = vpack.c.bf16 %v2175_v53, %v2174_v52  ;;  %v2194_v52 = vld [vmem:[%s3684_s1 + $0x380] sm:$0xff]  ;;  %v2195_v53 = vld [vmem:[%s3684_s1 + $0x390] sm:$0xff] }
  0x7f   :  { %698 = vperm.xlu1 %2407, %v2256_v55   ;;  %713 = vperm.xlu0 %2406, %v2259_v56  }
  0x83   :  { %1100 = vperm.xlu1 %2407, %v2310_v57   ;;  %703 = vperm.xlu0 %2406, %v2257_v58  }
  0x87   :  { %1090 = vperm.xlu1 %2407, %v2308_v59   ;;  %1105 = vperm.xlu0 %2406, %v2311_v60  }
  0x8b   :  { %1080 = vperm.xlu1 %2407, %v2306_v61   ;;  %1095 = vperm.xlu0 %2406, %v2309_v62  }
  0x8f   :  { %1070 = vperm.xlu1 %2407, %v2304_v63   ;;  %1085 = vperm.xlu0 %2406, %v2307_v0  }
  0x93   :  { %1060 = vperm.xlu1 %2407, %v2302_v1   ;;  %1075 = vperm.xlu0 %2406, %v2305_v2  }
  0x97   :  { %1050 = vperm.xlu1 %2407, %v2300_v4   ;;  %1065 = vperm.xlu0 %2406, %v2303_v5  }
  0x9b   :  { %1295 = vperm.xlu1 %2407, %v2328_v6   ;;  %1055 = vperm.xlu0 %2406, %v2301_v7  }
  0x9f   :  { %1285 = vperm.xlu1 %2407, %v2326_v8   ;;  %1300 = vperm.xlu0 %2406, %v2329_v9  }
  0xa3   :  { %1275 = vperm.xlu1 %2407, %v2324_v10   ;;  %1290 = vperm.xlu0 %2406, %v2327_v11  }
  0xa6   :  { %v92_v20 = vpop.permute.xlu0 %91  ;;  %v87_v23 = vpop.permute.xlu1 %86 }
  0xa7   :  { %1415 = vperm.xlu1 %2407, %v2338_v12   ;;  %1280 = vperm.xlu0 %2406, %v2325_v13  }
  0xaa   :  { %v82_v27 = vpop.permute.xlu0 %81  ;;  %v209_v63 = vpop.permute.xlu1 %208 }
  0xab   :  { %1410 = vperm.xlu1 %2407, %v2337_v14   ;;  %1405 = vperm.xlu0 %2406, %v2336_v15  }
  0xae   :  { %v214_v61 = vpop.permute.xlu0 %213  ;;  %v199_v5 = vpop.permute.xlu1 %198 }
  0xaf   :  { %1499 = vperm.xlu1 %2407, %v2344_v16   ;;  %1494 = vperm.xlu0 %2406, %v2343_v17  }
  0xb2   :  { %v204_v2 = vpop.permute.xlu0 %203 }
  0xb6   :  { %v194_v14 = vpop.permute.xlu0 %193 }
  0xf1   :  { %v142_v18 = vpop.f32.mrf.mxu0 }
  0xf2   :  { %v143_v37 = vadd.f32 %v142_v18, %v82_v27 }
  0xf3   :  { %v144_v19 = vpop.f32.mrf.mxu0 }
  0xf4   :  { %v145_v29 = vadd.f32 %v144_v19, %v82_v27  ;;  %v159_v44 = vmax.f32 %v143_v37, 0.0 }
  0xf5   :  { %v146_v21 = vpop.f32.mrf.mxu0 }
  0xf6   :  { %v147_v32 = vadd.f32 %v146_v21, %v87_v23  ;;  %v160_v39 = vmax.f32 %v145_v29, 0.0  ;;  %v189_v21 = vpop.permute.xlu1 %188 }
  0xf7   :  { %v148_v22 = vpop.f32.mrf.mxu0 }
  0xf8   :  { %v149_v25 = vadd.f32 %v148_v22, %v87_v23  ;;  %v161_v41 = vmax.f32 %v147_v32, 0.0 }
  0xf9   :  { %v152_v24 = vpop.f32.mrf.mxu0 }
  0xfa   :  { %v153_v26 = vadd.f32 %v152_v24, %v92_v20  ;;  %v162_v34 = vmax.f32 %v149_v25, 0.0  ;;  %v182_v47 = vpack.c.bf16 %v161_v41, %v159_v44  ;;  %v2189_v44 = vld [vmem:[%s3684_s1 + $0x330] sm:$0xff] }
  0xfb   :  { %v154_v28 = vpop.f32.mrf.mxu0 }
  0xfc   :  { %v163_v30 = vmax.f32 %v153_v26, 0.0  ;;  %v155_v31 = vadd.f32 %v154_v28, %v92_v20  ;;  %v183_v42 = vpack.c.bf16 %v162_v34, %v160_v39  ;;  %v2186_v39 = vld [vmem:[%s3684_s1 + $0x300] sm:$0xff] }
  0xfd   :  { %v156_v33 = vpop.f32.mrf.mxu0 }
  0xfe   :  { %v184_v35 = vpack.c.bf16 %v163_v30, %v163_v30  ;;  %v164_v36 = vmax.f32 %v155_v31, 0.0 }
  0xff   :  { %v157_v38 = vpop.f32.mrf.mxu0 }
 0x100   :  { %v185_v40 = vpack.c.bf16 %v164_v36, %v164_v36  ;;  %v228_v43 = vsel %vm226_vm2, %v184_v35, 0 }
 0x102   :  { %2182 = vmatprep.subr.msk.bf16.mxu1 %vm226_vm2, %v185_v40  ;;  %v2187_v40 = vld [vmem:[%s3684_s1 + $0x310] sm:$0xff] }
 0x103   :  { %246 = vmatpush1.bf16.msra.mxu1 %v228_v43  ;;  %v2188_v43 = vld [vmem:[%s3684_s1 + $0x320] sm:$0xff] }
 0x104   :  { %247 = vmatprep.subr.bf16.mxu1 %v183_v42  ;;  %v321_v42 = vpack.c.bf16 %v2187_v40, %v2186_v39  ;;  %v322_v45 = vpack.c.bf16 %v2189_v44, %v2188_v43 }
 0x107   :  { %248 = vmatpush1.bf16.msra.mxu1 %v182_v47  ;;  %v2191_v47 = vld [vmem:[%s3684_s1 + $0x350] sm:$0xff] }
 0x10a   :  { %2183 = vmatmul.mubr.msk.bf16.vlgmr.msra.gmra.mxu1 %vm216_vm3, %v172_v48  ;;  %v323_v48 = vpack.c.bf16 %v2191_v47, %v2190_v46 }
 0x10b   :  { %275 = vmatprep.mubr.bf16.mxu1 %v2473_v3 }
 0x112   :  { %2184 = vmatmul.mubr.msk.bf16.gmra.mxu1 %vm216_vm3, %v173_v51  ;;  %v324_v51 = vpack.c.bf16 %v2193_v50, %v2192_v49 }
 0x113   :  { %285 = vmatprep.mubr.bf16.mxu1 %v2473_v3 }
 0x11a   :  { %2185 = vmatmul.mubr.msk.bf16.gmra.mxu1 %vm216_vm3, %v174_v54  ;;  %v325_v54 = vpack.c.bf16 %v2195_v53, %v2194_v52 }
 0x11b   :  { %805 = vmatprep.mubr.bf16.mxu1 %v2473_v3 }
 0x1ca   :  { %v267_v55 = vpop.f32.mrf.mxu1 }
 0x1cb   :  { %v268_v32 = vadd.f32 %v267_v55, %v189_v21  ;;  %v2196_v55 = vld [vmem:[%s3684_s1 + $0x3a0] sm:$0xff] }
 0x1cc   :  { %v269_v56 = vpop.f32.mrf.mxu1 }
 0x1cd   :  { %v270_v24 = vadd.f32 %v269_v56, %v189_v21  ;;  %v296_v38 = vmax.f32 %v268_v32, 0.0  ;;  %v2197_v56 = vld [vmem:[%s3684_s1 + $0x3b0] sm:$0xff] }
 0x1ce   :  { %v271_v57 = vpop.f32.mrf.mxu1 }
 0x1cf   :  { %v272_v27 = vadd.f32 %v271_v57, %v194_v14  ;;  %v297_v34 = vmax.f32 %v270_v24, 0.0  ;;  %v326_v57 = vpack.c.bf16 %v2197_v56, %v2196_v55 }
 0x1d0   :  { %v273_v58 = vpop.f32.mrf.mxu1 }
 0x1d1   :  { %v274_v17 = vadd.f32 %v273_v58, %v194_v14  ;;  %v298_v35 = vmax.f32 %v272_v27, 0.0 }
 0x1d2   :  { %v277_v59 = vpop.f32.mrf.mxu1 }
 0x1d3   :  { %v278_v22 = vadd.f32 %v277_v59, %v199_v5  ;;  %v299_v30 = vmax.f32 %v274_v17, 0.0  ;;  %v340_v41 = vpack.c.bf16 %v298_v35, %v296_v38 }
 0x1d4   :  { %v279_v60 = vpop.f32.mrf.mxu1 }
 0x1d5   :  { %v280_v12 = vadd.f32 %v279_v60, %v199_v5  ;;  %v300_v33 = vmax.f32 %v278_v22, 0.0  ;;  %v341_v37 = vpack.c.bf16 %v299_v30, %v297_v34 }
 0x1d6   :  { %v281_v62 = vpop.f32.mrf.mxu1 }
 0x1d7   :  { %v282_v15 = vadd.f32 %v281_v62, %v204_v2  ;;  %v301_v25 = vmax.f32 %v280_v12, 0.0  ;;  %v399_v12 = vpop.permute.xlu1 %398 }
 0x1d8   :  { %v283_v0 = vpop.f32.mrf.mxu1 }
 0x1d9   :  { %v284_v7 = vadd.f32 %v283_v0, %v204_v2  ;;  %v302_v28 = vmax.f32 %v282_v15, 0.0 }
 0x1da   :  { %v287_v1 = vpop.f32.mrf.mxu1 }
 0x1db   :  { %v288_v10 = vadd.f32 %v287_v1, %v209_v63  ;;  %v303_v18 = vmax.f32 %v284_v7, 0.0  ;;  %v342_v36 = vpack.c.bf16 %v302_v28, %v300_v33  ;;  %v389_v17 = vpop.permute.xlu1 %388 }
 0x1dc   :  { %v289_v4 = vpop.f32.mrf.mxu1 }
 0x1dd   :  { %v290_v8 = vadd.f32 %v289_v4, %v209_v63  ;;  %v304_v23 = vmax.f32 %v288_v10, 0.0  ;;  %v343_v31 = vpack.c.bf16 %v303_v18, %v301_v25  ;;  %v404_v10 = vpop.permute.xlu0 %403 }
 0x1de   :  { %v291_v6 = vpop.f32.mrf.mxu1 }
 0x1df   :  { %v292_v9 = vadd.f32 %v291_v6, %v214_v61  ;;  %v305_v19 = vmax.f32 %v290_v8, 0.0  ;;  %v379_v22 = vpop.permute.xlu1 %378 }
 0x1e0   :  { %v293_v11 = vpop.f32.mrf.mxu1 }
 0x1e1   :  { %v294_v13 = vadd.f32 %v293_v11, %v214_v61  ;;  %v306_v16 = vmax.f32 %v292_v9, 0.0  ;;  %v394_v15 = vpop.permute.xlu0 %393 }
 0x1e3   :  { %v307_v20 = vmax.f32 %v294_v13, 0.0  ;;  %v344_v29 = vpack.c.bf16 %v306_v16, %v304_v23  ;;  %v369_v38 = vpop.permute.xlu1 %368 }
 0x1e5   :  { %v345_v26 = vpack.c.bf16 %v307_v20, %v305_v19  ;;  %v384_v20 = vpop.permute.xlu0 %383 }
 0x1e7   :  { %435 = vmatprep.subr.bf16.mxu0 %v345_v26  ;;  %v359_v55 = vpop.permute.xlu1 %358 }
 0x1e8   :  { %436 = vmatpush1.bf16.msra.mxu0 %v344_v29 }
 0x1e9   :  { %437 = vmatprep.subr.bf16.mxu0 %v343_v31  ;;  %v374_v31 = vpop.permute.xlu0 %373 }
 0x1ec   :  { %438 = vmatpush1.bf16.msra.mxu0 %v342_v36 }
 0x1ed   :  { %439 = vmatprep.subr.bf16.mxu0 %v341_v37  ;;  %v364_v50 = vpop.permute.xlu0 %363 }
 0x1f0   :  { %440 = vmatpush1.bf16.msra.mxu0 %v340_v41 }
 0x1f3   :  { %2210 = vmatmul.mubr.msk.bf16.vlgmr.msra.gmra.mxu0 %vm406_vm4, %v321_v42 }
 0x1f4   :  { %467 = vmatprep.mubr.bf16.mxu0 %v2473_v3 }
 0x1fb   :  { %2211 = vmatmul.mubr.msk.bf16.gmra.mxu0 %vm406_vm4, %v322_v45 }
 0x1fc   :  { %477 = vmatprep.mubr.bf16.mxu0 %v2473_v3 }
 0x203   :  { %2212 = vmatmul.mubr.msk.bf16.gmra.mxu0 %vm406_vm4, %v323_v48 }
 0x204   :  { %487 = vmatprep.mubr.bf16.mxu0 %v2473_v3 }
 0x20b   :  { %2213 = vmatmul.mubr.msk.bf16.gmra.mxu0 %vm406_vm4, %v324_v51 }
 0x20c   :  { %497 = vmatprep.mubr.bf16.mxu0 %v2473_v3 }
 0x213   :  { %2214 = vmatmul.mubr.msk.bf16.gmra.mxu0 %vm406_vm4, %v325_v54 }
 0x214   :  { %507 = vmatprep.mubr.bf16.mxu0 %v2473_v3 }
 0x21b   :  { %2215 = vmatmul.mubr.msk.bf16.gmra.mxu0 %vm406_vm4, %v326_v57 }
 0x2b3   :  { %v2831_v58 = vpop.f32.mrf.mxu0 }
 0x2b5   :  { %v2833_v59 = vpop.f32.mrf.mxu0 }
 0x2b7   :  { %v2835_v60 = vpop.f32.mrf.mxu0 }
 0x2b9   :  { %v2837_v61 = vpop.f32.mrf.mxu0 }
 0x2bb   :  { %v2839_v62 = vpop.f32.mrf.mxu0 }
 0x2bd   :  { %v2841_v63 = vpop.f32.mrf.mxu0 }
 0x2bf   :  { %v2843_v0 = vpop.f32.mrf.mxu0 }
 0x2c1   :  { %v475_v1 = vpop.f32.mrf.mxu0 }
 0x2c3   :  { %v479_v2 = vpop.f32.mrf.mxu0 }
 0x2c5   :  { %v481_v4 = vpop.f32.mrf.mxu0 }
 0x2c6   :  { %v482_v53 = vadd.f32 %v481_v4, %v369_v38 }
 0x2c7   :  { %v483_v5 = vpop.f32.mrf.mxu0 }
 0x2c8   :  { %v484_v56 = vadd.f32 %v483_v5, %v374_v31 }
 0x2c9   :  { %v485_v6 = vpop.f32.mrf.mxu0 }
 0x2ca   :  { %v486_v47 = vadd.f32 %v485_v6, %v374_v31  ;;  %v472_v6 = vadd.f32 %v2841_v63, %v359_v55  ;;  %v528_v4 = vmax.f32 %v484_v56, 0.0  ;;  %v2218_v31 = vld [vmem:[%s3684_s1 + $0x4a0] sm:$0xff]  ;;  %v2235_v56 = vld [vmem:[%s3684_s1 + $0x5b0] sm:$0xff] }
 0x2cb   :  { %v489_v7 = vpop.f32.mrf.mxu0 }
 0x2cc   :  { %v490_v51 = vadd.f32 %v489_v7, %v379_v22  ;;  %v354_v7 = vpop.permute.xlu0 %353 }
 0x2cd   :  { %v491_v8 = vpop.f32.mrf.mxu0  ;;  %v464_v63 = vadd.f32 %v2835_v60, %v354_v7  ;;  %v2217_v60 = vld [vmem:[%s3684_s1 + $0x490] sm:$0xff] }
 0x2ce   :  { %v492_v41 = vadd.f32 %v491_v8, %v379_v22 }
 0x2cf   :  { %v493_v9 = vpop.f32.mrf.mxu0 }
 0x2d0   :  { %v494_v44 = vadd.f32 %v493_v9, %v384_v20  ;;  %v531_v54 = vmax.f32 %v492_v41, 0.0  ;;  %v2225_v41 = vld [vmem:[%s3684_s1 + $0x510] sm:$0xff] }
 0x2d1   :  { %v495_v11 = vpop.f32.mrf.mxu0 }
 0x2d2   :  { %v496_v34 = vadd.f32 %v495_v11, %v384_v20  ;;  %v532_v57 = vmax.f32 %v494_v44, 0.0  ;;  %v529_v11 = vmax.f32 %v486_v47, 0.0  ;;  %v2227_v44 = vld [vmem:[%s3684_s1 + $0x530] sm:$0xff] }
 0x2d3   :  { %v499_v13 = vpop.f32.mrf.mxu0  ;;  %v2229_v47 = vld [vmem:[%s3684_s1 + $0x550] sm:$0xff] }
 0x2d4   :  { %v500_v39 = vadd.f32 %v499_v13, %v389_v17  ;;  %v533_v48 = vmax.f32 %v496_v34, 0.0  ;;  %v530_v13 = vmax.f32 %v490_v51, 0.0  ;;  %v2220_v34 = vld [vmem:[%s3684_s1 + $0x4c0] sm:$0xff] }
 0x2d5   :  { %v501_v14 = vpop.f32.mrf.mxu0 }
 0x2d6   :  { %v502_v29 = vadd.f32 %v501_v14, %v389_v17  ;;  %v534_v52 = vmax.f32 %v500_v39, 0.0  ;;  %v611_v9 = vpack.c.bf16 %v533_v48, %v531_v54  ;;  %v527_v14 = vmax.f32 %v482_v53, 0.0  ;;  %v2233_v53 = vld [vmem:[%s3684_s1 + $0x590] sm:$0xff] }
 0x2d7   :  { %v503_v16 = vpop.f32.mrf.mxu0  ;;  %v466_v17 = vadd.f32 %v2837_v61, %v354_v7 }
 0x2d8   :  { %v504_v32 = vadd.f32 %v503_v16, %v394_v15  ;;  %v535_v42 = vmax.f32 %v502_v29, 0.0  ;;  %v610_v16 = vpack.c.bf16 %v532_v57, %v530_v13 }
 0x2d9   :  { %v505_v18 = vpop.f32.mrf.mxu0 }
 0x2da   :  { %v506_v24 = vadd.f32 %v505_v18, %v394_v15  ;;  %v536_v45 = vmax.f32 %v504_v32, 0.0  ;;  %v474_v15 = vadd.f32 %v2843_v0, %v364_v50  ;;  %v609_v18 = vpack.c.bf16 %v529_v11, %v527_v14  ;;  %v2219_v32 = vld [vmem:[%s3684_s1 + $0x4b0] sm:$0xff]  ;;  %v2950_v14 = vpop.permute.xlu0 %693 }
 0x2db   :  { %v509_v19 = vpop.f32.mrf.mxu0  ;;  %v521_v0 = vmax.f32 %v466_v17, 0.0 }
 0x2dc   :  { %v510_v27 = vadd.f32 %v509_v19, %v399_v12  ;;  %v537_v35 = vmax.f32 %v506_v24, 0.0  ;;  %v612_v8 = vpack.c.bf16 %v536_v45, %v534_v52  ;;  %v349_v19 = vpop.permute.xlu1 %348  ;;  %v524_v22 = vmax.f32 %v474_v15, 0.0  ;;  %v2232_v52 = vld [vmem:[%s3684_s1 + $0x580] sm:$0xff] }
 0x2dd   :  { %v511_v21 = vpop.f32.mrf.mxu0  ;;  %v575_v54 = vpack.c.bf16 %v2233_v53, %v2232_v52 }
 0x2de   :  { %v512_v25 = vadd.f32 %v511_v21, %v399_v12  ;;  %v538_v40 = vmax.f32 %v510_v27, 0.0  ;;  %v613_v49 = vpack.c.bf16 %v537_v35, %v535_v42  ;;  %v480_v12 = vadd.f32 %v479_v2, %v369_v38  ;;  %v2221_v35 = vld [vmem:[%s3684_s1 + $0x4d0] sm:$0xff]  ;;  %v2954_v15 = vpop.permute.xlu0 %683 }
 0x2df   :  { %v513_v23 = vpop.f32.mrf.mxu0  ;;  %v462_v2 = vadd.f32 %v2833_v59, %v349_v19  ;;  %v523_v21 = vmax.f32 %v472_v6, 0.0  ;;  %v520_v27 = vmax.f32 %v464_v63, 0.0  ;;  %v2216_v59 = vld [vmem:[%s3684_s1 + $0x480] sm:$0xff]  ;;  %v2223_v38 = vld [vmem:[%s3684_s1 + $0x4f0] sm:$0xff] }
 0x2e0   :  { %v514_v26 = vadd.f32 %v513_v23, %v404_v10  ;;  %v539_v36 = vmax.f32 %v512_v25, 0.0  ;;  %v526_v20 = vmax.f32 %v480_v12, 0.0  ;;  %v460_v25 = vadd.f32 %v2831_v58, %v349_v19  ;;  %v2239_v12 = vld [vmem:[%s3684_s1 + $0x5f0] sm:$0xff]  ;;  %v2948_v6 = vpop.permute.xlu1 %688  ;;  %v2277_v19 = vld [vmem:[%s3684_s1 + $0x608] sm:$0xff] }
 0x2e1   :  { %v515_v28 = vpop.f32.mrf.mxu0  ;;  %v567_v58 = vpack.c.bf16 %v2217_v60, %v2216_v59 }
 0x2e2   :  { %v516_v30 = vadd.f32 %v515_v28, %v404_v10  ;;  %v540_v33 = vmax.f32 %v514_v26, 0.0  ;;  %v476_v10 = vadd.f32 %v475_v1, %v364_v50  ;;  %v470_v1 = vadd.f32 %v2839_v62, %v359_v55  ;;  %v2231_v50 = vld [vmem:[%s3684_s1 + $0x570] sm:$0xff]  ;;  %v2234_v55 = vld [vmem:[%s3684_s1 + $0x5a0] sm:$0xff] }
 0x2e3   :  { %v608_v23 = vpack.c.bf16 %v528_v4, %v526_v20  ;;  %v519_v26 = vmax.f32 %v462_v2, 0.0  ;;  %v518_v29 = vmax.f32 %v460_v25, 0.0  ;;  %v576_v57 = vpack.c.bf16 %v2235_v56, %v2234_v55 }
 0x2e4   :  { %v541_v37 = vmax.f32 %v516_v30, 0.0  ;;  %v614_v46 = vpack.c.bf16 %v540_v33, %v538_v40  ;;  %v525_v5 = vmax.f32 %v476_v10, 0.0  ;;  %v522_v61 = vmax.f32 %v470_v1, 0.0  ;;  %v2224_v40 = vld [vmem:[%s3684_s1 + $0x500] sm:$0xff]  ;;  %v2237_v10 = vld [vmem:[%s3684_s1 + $0x5d0] sm:$0xff]  ;;  %v2952_v7 = vpop.permute.xlu1 %678  ;;  %v2279_v1 = vld [vmem:[%s3684_s1 + $0x618] sm:$0xff] }
 0x2e5   :  { %v605_v28 = vpack.c.bf16 %v521_v0, %v519_v26  ;;  %v604_v30 = vpack.c.bf16 %v520_v27, %v518_v29  ;;  %v568_v33 = vpack.c.bf16 %v2219_v32, %v2218_v31  ;;  %v571_v42 = vpack.c.bf16 %v2225_v41, %v2224_v40 }
 0x2e6   :  { %v615_v43 = vpack.c.bf16 %v541_v37, %v539_v36  ;;  %v607_v24 = vpack.c.bf16 %v525_v5, %v523_v21  ;;  %v606_v62 = vpack.c.bf16 %v524_v22, %v522_v61  ;;  %v569_v36 = vpack.c.bf16 %v2221_v35, %v2220_v34  ;;  %v2222_v37 = vld [vmem:[%s3684_s1 + $0x4e0] sm:$0xff] }
 0x2e7   :  { %v570_v39 = vpack.c.bf16 %v2223_v38, %v2222_v37  ;;  %v1000_v2 = vpack.c.bf16 %v2279_v1, %v2277_v19 }
 0x2e8   :  { %777 = vmatprep.subr.bf16.mxu1 %v615_v43  ;;  %v2226_v43 = vld [vmem:[%s3684_s1 + $0x520] sm:$0xff]  ;;  %v2956_v4 = vpop.permute.xlu1 %668 }
 0x2e9   :  { %778 = vmatpush1.bf16.msra.mxu1 %v614_v46  ;;  %v572_v45 = vpack.c.bf16 %v2227_v44, %v2226_v43  ;;  %v2228_v46 = vld [vmem:[%s3684_s1 + $0x540] sm:$0xff]  ;;  %2312 = vmatprep.mubr.msk.bf16.mxu0 %vm1108_vm6, %v1000_v2 }
 0x2ea   :  { %779 = vmatprep.subr.bf16.mxu1 %v613_v49  ;;  %v573_v48 = vpack.c.bf16 %v2229_v47, %v2228_v46  ;;  %v2230_v49 = vld [vmem:[%s3684_s1 + $0x560] sm:$0xff] }
 0x2eb   :  { %v574_v51 = vpack.c.bf16 %v2231_v50, %v2230_v49 }
 0x2ec   :  { %v2960_v17 = vpop.permute.xlu1 %658 }
 0x2ed   :  { %780 = vmatpush1.bf16.msra.mxu1 %v612_v8  ;;  %v2236_v8 = vld [vmem:[%s3684_s1 + $0x5c0] sm:$0xff] }
 0x2ee   :  { %781 = vmatprep.subr.bf16.mxu1 %v611_v9  ;;  %v577_v11 = vpack.c.bf16 %v2237_v10, %v2236_v8  ;;  %v2238_v9 = vld [vmem:[%s3684_s1 + $0x5e0] sm:$0xff] }
 0x2ef   :  { %v578_v13 = vpack.c.bf16 %v2239_v12, %v2238_v9 }
 0x2f1   :  { %782 = vmatpush1.bf16.msra.mxu1 %v610_v16  ;;  %v2958_v16 = vpop.permute.xlu0 %673 }
 0x2f2   :  { %783 = vmatprep.subr.bf16.mxu1 %v609_v18  ;;  %v2964_v18 = vpop.permute.xlu1 %648 }
 0x2f5   :  { %784 = vmatpush1.bf16.msra.mxu1 %v608_v23  ;;  %v2962_v5 = vpop.permute.xlu0 %663 }
 0x2f6   :  { %785 = vmatprep.subr.bf16.mxu1 %v607_v24  ;;  %v2975_v21 = vpop.permute.xlu1 %638 }
 0x2f9   :  { %786 = vmatpush1.bf16.msra.mxu1 %v606_v62  ;;  %v2972_v20 = vpop.permute.xlu0 %653 }
 0x2fa   :  { %787 = vmatprep.subr.bf16.mxu1 %v605_v28  ;;  %v629_v22 = vpop.permute.xlu1 %628 }
 0x2fd   :  { %788 = vmatpush1.bf16.msra.mxu1 %v604_v30  ;;  %v2977_v63 = vpop.permute.xlu0 %643 }
 0x2fe   :  { %v619_v24 = vpop.permute.xlu1 %618 }
 0x300   :  { %2264 = vmatmul.mubr.msk.bf16.vlgmr.msra.gmra.mxu1 %vm736_vm5, %v567_v58 }
 0x301   :  { %815 = vmatprep.mubr.bf16.mxu1 %v2473_v3  ;;  %v634_v23 = vpop.permute.xlu0 %633 }
 0x305   :  { %v624_v26 = vpop.permute.xlu0 %623 }
 0x308   :  { %2265 = vmatmul.mubr.msk.bf16.gmra.mxu1 %vm736_vm5, %v568_v33 }
 0x309   :  { %825 = vmatprep.mubr.bf16.mxu1 %v2473_v3 }
 0x310   :  { %2266 = vmatmul.mubr.msk.bf16.gmra.mxu1 %vm736_vm5, %v569_v36 }
 0x311   :  { %835 = vmatprep.mubr.bf16.mxu1 %v2473_v3 }
 0x318   :  { %2267 = vmatmul.mubr.msk.bf16.gmra.mxu1 %vm736_vm5, %v570_v39 }
 0x319   :  { %845 = vmatprep.mubr.bf16.mxu1 %v2473_v3 }
 0x320   :  { %2268 = vmatmul.mubr.msk.bf16.gmra.mxu1 %vm736_vm5, %v571_v42 }
 0x321   :  { %855 = vmatprep.mubr.bf16.mxu1 %v2473_v3 }
 0x328   :  { %2269 = vmatmul.mubr.msk.bf16.gmra.mxu1 %vm736_vm5, %v572_v45 }
 0x329   :  { %865 = vmatprep.mubr.bf16.mxu1 %v2473_v3 }
 0x330   :  { %2270 = vmatmul.mubr.msk.bf16.gmra.mxu1 %vm736_vm5, %v573_v48 }
 0x331   :  { %875 = vmatprep.mubr.bf16.mxu1 %v2473_v3 }
 0x338   :  { %2271 = vmatmul.mubr.msk.bf16.gmra.mxu1 %vm736_vm5, %v574_v51 }
 0x339   :  { %885 = vmatprep.mubr.bf16.mxu1 %v2473_v3 }
 0x340   :  { %2272 = vmatmul.mubr.msk.bf16.gmra.mxu1 %vm736_vm5, %v575_v54 }
 0x341   :  { %895 = vmatprep.mubr.bf16.mxu1 %v2473_v3 }
 0x348   :  { %2273 = vmatmul.mubr.msk.bf16.gmra.mxu1 %vm736_vm5, %v576_v57 }
 0x349   :  { %905 = vmatprep.mubr.bf16.mxu1 %v2473_v3 }
 0x350   :  { %2274 = vmatmul.mubr.msk.bf16.gmra.mxu1 %vm736_vm5, %v577_v11 }
 0x351   :  { %915 = vmatprep.mubr.bf16.mxu1 %v2473_v3 }
 0x358   :  { %2275 = vmatmul.mubr.msk.bf16.gmra.mxu1 %vm736_vm5, %v578_v13 }
 0x359   :  { %1456 = vmatprep.mubr.bf16.mxu1 %v2473_v3 }
 0x3c0   :  { %v807_v0 = vpop.f32.mrf.mxu1 }
 0x3c1   :  { %v808_v61 = vadd.f32 %v807_v0, %v619_v24 }
 0x3c2   :  { %v809_v25 = vpop.f32.mrf.mxu1 }
 0x3c3   :  { %v810_v62 = vadd.f32 %v809_v25, %v619_v24  ;;  %v926_v59 = vmax.f32 %v808_v61, 0.0 }
 0x3c4   :  { %v811_v27 = vpop.f32.mrf.mxu1 }
 0x3c5   :  { %v812_v28 = vadd.f32 %v811_v27, %v624_v26  ;;  %v927_v31 = vmax.f32 %v810_v62, 0.0 }
 0x3c6   :  { %v813_v29 = vpop.f32.mrf.mxu1 }
 0x3c7   :  { %v928_v60 = vmax.f32 %v812_v28, 0.0  ;;  %v814_v30 = vadd.f32 %v813_v29, %v624_v26 }
 0x3c8   :  { %v817_v58 = vpop.f32.mrf.mxu1 }
 0x3c9   :  { %v2979_v32 = vpack.c.bf16 %v928_v60, %v926_v59  ;;  %v929_v33 = vmax.f32 %v814_v30, 0.0  ;;  %v818_v36 = vadd.f32 %v817_v58, %v629_v22 }
 0x3ca   :  { %v819_v34 = vpop.f32.mrf.mxu1 }
 0x3cb   :  { %v2981_v35 = vpack.c.bf16 %v929_v33, %v927_v31  ;;  %v820_v38 = vadd.f32 %v819_v34, %v629_v22  ;;  %v930_v41 = vmax.f32 %v818_v36, 0.0 }
 0x3cc   :  { %v821_v37 = vpop.f32.mrf.mxu1 }
 0x3cd   :  { %v822_v39 = vadd.f32 %v821_v37, %v634_v23  ;;  %v931_v45 = vmax.f32 %v820_v38, 0.0 }
 0x3ce   :  { %v823_v40 = vpop.f32.mrf.mxu1 }
 0x3cf   :  { %v932_v42 = vmax.f32 %v822_v39, 0.0  ;;  %v824_v43 = vadd.f32 %v823_v40, %v634_v23 }
 0x3d0   :  { %v2983_v44 = vpop.f32.mrf.mxu1 }
 0x3d1   :  { %v2985_v46 = vpack.c.bf16 %v932_v42, %v930_v41  ;;  %v933_v47 = vmax.f32 %v824_v43, 0.0 }
 0x3d2   :  { %v2987_v48 = vpop.f32.mrf.mxu1 }
 0x3d3   :  { %v2989_v49 = vpack.c.bf16 %v933_v47, %v931_v45 }
 0x3d4   :  { %v2991_v50 = vpop.f32.mrf.mxu1 }
 0x3d6   :  { %v2993_v51 = vpop.f32.mrf.mxu1 }
 0x3d8   :  { %v2995_v52 = vpop.f32.mrf.mxu1 }
 0x3da   :  { %v2997_v53 = vpop.f32.mrf.mxu1 }
 0x3dc   :  { %v2999_v54 = vpop.f32.mrf.mxu1 }
 0x3de   :  { %v843_v55 = vpop.f32.mrf.mxu1 }
 0x3e0   :  { %v847_v56 = vpop.f32.mrf.mxu1 }
 0x3e2   :  { %v849_v57 = vpop.f32.mrf.mxu1 }
 0x3e4   :  { %v851_v8 = vpop.f32.mrf.mxu1 }
 0x3e6   :  { %v853_v10 = vpop.f32.mrf.mxu1 }
 0x3e7   :  { %v854_v43 = vadd.f32 %v853_v10, %v2962_v5  ;;  %v844_v10 = vadd.f32 %v843_v55, %v2972_v20  ;;  %v834_v55 = vadd.f32 %v2993_v51, %v2977_v63 }
 0x3e8   :  { %v857_v11 = vpop.f32.mrf.mxu1 }
 0x3e9   :  { %v937_v51 = vmax.f32 %v834_v55, 0.0 }
 0x3ea   :  { %v859_v9 = vpop.f32.mrf.mxu1 }
 0x3ec   :  { %v861_v12 = vpop.f32.mrf.mxu1 }
 0x3ee   :  { %v863_v13 = vpop.f32.mrf.mxu1 }
 0x3ef   :  { %v864_v58 = vadd.f32 %v863_v13, %v2958_v16 }
 0x3f0   :  { %v867_v19 = vpop.f32.mrf.mxu1 }
 0x3f1   :  { %v868_v36 = vadd.f32 %v867_v19, %v2952_v7  ;;  %v949_v45 = vmax.f32 %v864_v58, 0.0 }
 0x3f2   :  { %v869_v1 = vpop.f32.mrf.mxu1 }
 0x3f3   :  { %v870_v28 = vadd.f32 %v869_v1, %v2952_v7  ;;  %v858_v7 = vadd.f32 %v857_v11, %v2956_v4  ;;  %v950_v13 = vmax.f32 %v868_v36, 0.0 }
 0x3f4   :  { %v871_v2 = vpop.f32.mrf.mxu1 }
 0x3f5   :  { %v872_v59 = vadd.f32 %v871_v2, %v2954_v15  ;;  %v951_v39 = vmax.f32 %v870_v28, 0.0  ;;  %v946_v11 = vmax.f32 %v858_v7, 0.0 }
 0x3f6   :  { %v873_v22 = vpop.f32.mrf.mxu1 }
 0x3f7   :  { %v874_v25 = vadd.f32 %v873_v22, %v2954_v15  ;;  %v952_v15 = vmax.f32 %v872_v59, 0.0 }
 0x3f8   :  { %v877_v23 = vpop.f32.mrf.mxu1 }
 0x3f9   :  { %v878_v27 = vadd.f32 %v877_v23, %v2948_v6  ;;  %v953_v31 = vmax.f32 %v874_v25, 0.0  ;;  %v1036_v2 = vpack.c.bf16 %v952_v15, %v950_v13  ;;  %v945_v23 = vmax.f32 %v854_v43, 0.0 }
 0x3fa   :  { %v879_v0 = vpop.f32.mrf.mxu1 }
 0x3fb   :  { %v880_v61 = vadd.f32 %v879_v0, %v2948_v6  ;;  %v954_v37 = vmax.f32 %v878_v27, 0.0  ;;  %v860_v6 = vadd.f32 %v859_v9, %v2956_v4  ;;  %v1037_v47 = vpack.c.bf16 %v953_v31, %v951_v39  ;;  %v734_v31 = vpop.permute.xlu0 %733 }
 0x3fc   :  { %v881_v24 = vpop.f32.mrf.mxu1  ;;  %v850_v9 = vadd.f32 %v849_v57, %v2960_v17  ;;  %v848_v4 = vadd.f32 %v847_v56, %v2960_v17  ;;  %v840_v57 = vadd.f32 %v2997_v53, %v2964_v18  ;;  %v941_v17 = vmax.f32 %v844_v10, 0.0 }
 0x3fd   :  { %v882_v26 = vadd.f32 %v881_v24, %v2950_v14  ;;  %v955_v33 = vmax.f32 %v880_v61, 0.0  ;;  %v947_v1 = vmax.f32 %v860_v6, 0.0  ;;  %v838_v27 = vadd.f32 %v2995_v52, %v2964_v18 }
 0x3fe   :  { %v883_v62 = vpop.f32.mrf.mxu1  ;;  %v943_v25 = vmax.f32 %v850_v9, 0.0  ;;  %v830_v53 = vadd.f32 %v2987_v48, %v2975_v21  ;;  %v828_v18 = vadd.f32 %v2983_v44, %v2975_v21  ;;  %v729_v48 = vpop.permute.xlu1 %728 }
 0x3ff   :  { %v884_v29 = vadd.f32 %v883_v62, %v2950_v14  ;;  %v956_v60 = vmax.f32 %v882_v26, 0.0  ;;  %v862_v14 = vadd.f32 %v861_v12, %v2958_v16  ;;  %v852_v16 = vadd.f32 %v851_v8, %v2962_v5 }
 0x400   :  { %v3008_v30 = vpop.f32.mrf.mxu1  ;;  %v1035_v0 = vpack.c.bf16 %v949_v45, %v947_v1  ;;  %v842_v5 = vadd.f32 %v2999_v54, %v2972_v20  ;;  %v1033_v56 = vpack.c.bf16 %v945_v23, %v943_v25  ;;  %v942_v62 = vmax.f32 %v848_v4, 0.0 }
 0x401   :  { %v957_v34 = vmax.f32 %v884_v29, 0.0  ;;  %v1038_v41 = vpack.c.bf16 %v956_v60, %v954_v37  ;;  %v948_v12 = vmax.f32 %v862_v14, 0.0  ;;  %v944_v8 = vmax.f32 %v852_v16, 0.0 }
 0x402   :  { %v3012_v38 = vpop.f32.mrf.mxu1  ;;  %v939_v29 = vmax.f32 %v840_v57, 0.0  ;;  %v832_v20 = vadd.f32 %v2991_v50, %v2977_v63  ;;  %v940_v54 = vmax.f32 %v842_v5, 0.0  ;;  %v938_v52 = vmax.f32 %v838_v27, 0.0 }
 0x403   :  { %v1039_v40 = vpack.c.bf16 %v957_v34, %v955_v33  ;;  %v1034_v61 = vpack.c.bf16 %v948_v12, %v946_v11  ;;  %v1032_v59 = vpack.c.bf16 %v944_v8, %v942_v62  ;;  %v935_v34 = vmax.f32 %v830_v53, 0.0 }
 0x404   :  { %v3016_v42 = vpop.f32.mrf.mxu1  ;;  %v1031_v58 = vpack.c.bf16 %v941_v17, %v939_v29  ;;  %v936_v36 = vmax.f32 %v832_v20, 0.0  ;;  %v1030_v37 = vpack.c.bf16 %v940_v54, %v938_v52  ;;  %v934_v63 = vmax.f32 %v828_v18, 0.0  ;;  %v2283_v52 = vld [vmem:[%s3684_s1 + $0x638] sm:$0xff] }
 0x405   :  { %1127 = vmatprep.subr.bf16.mxu0 %v1039_v40  ;;  %v1029_v39 = vpack.c.bf16 %v937_v51, %v935_v34  ;;  %v724_v40 = vpop.permute.xlu0 %723 }
 0x406   :  { %v3020_v19 = vpop.f32.mrf.mxu1  ;;  %1128 = vmatpush1.bf16.msra.mxu0 %v1038_v41  ;;  %v1028_v14 = vpack.c.bf16 %v936_v36, %v934_v63  ;;  %v719_v41 = vpop.permute.xlu1 %718  ;;  %v2280_v36 = vld [vmem:[%s3684_s1 + $0x620] sm:$0xff] }
 0x407   :  { %1129 = vmatprep.subr.bf16.mxu0 %v1037_v47 }
 0x408   :  { %v3024_v22 = vpop.f32.mrf.mxu1 }
 0x409   :  { %v714_v7 = vpop.permute.xlu0 %713 }
 0x40a   :  { %v3028_v24 = vpop.f32.mrf.mxu1  ;;  %1130 = vmatpush1.bf16.msra.mxu0 %v1036_v2  ;;  %v709_v12 = vpop.permute.xlu1 %708 }
 0x40b   :  { %1131 = vmatprep.subr.bf16.mxu0 %v1035_v0  ;;  %v900_v25 = vadd.f32 %v3028_v24, %v709_v12 }
 0x40c   :  { %v3034_v26 = vpop.f32.mrf.mxu1 }
 0x40d   :  { %v963_v24 = vmax.f32 %v900_v25, 0.0 }
 0x40e   :  { %v903_v28 = vpop.f32.mrf.mxu1  ;;  %1132 = vmatpush1.bf16.msra.mxu0 %v1034_v61  ;;  %v902_v61 = vadd.f32 %v3034_v26, %v714_v7  ;;  %v699_v62 = vpop.permute.xlu1 %698 }
 0x40f   :  { %1133 = vmatprep.subr.bf16.mxu0 %v1033_v56  ;;  %v904_v23 = vadd.f32 %v903_v28, %v714_v7  ;;  %v898_v28 = vadd.f32 %v3024_v22, %v709_v12  ;;  %v2295_v7 = vld [vmem:[%s3684_s1 + $0x698] sm:$0xff]  ;;  %v2297_v12 = vld [vmem:[%s3684_s1 + $0x6a8] sm:$0xff] }
 0x410   :  { %v907_v60 = vpop.f32.mrf.mxu1  ;;  %v964_v20 = vmax.f32 %v902_v61, 0.0 }
 0x411   :  { %v908_v11 = vadd.f32 %v907_v60, %v719_v41  ;;  %v965_v56 = vmax.f32 %v904_v23, 0.0  ;;  %v962_v60 = vmax.f32 %v898_v28, 0.0 }
 0x412   :  { %v909_v33 = vpop.f32.mrf.mxu1  ;;  %1134 = vmatpush1.bf16.msra.mxu0 %v1032_v59 }
 0x413   :  { %1135 = vmatprep.subr.bf16.mxu0 %v1031_v58  ;;  %v910_v1 = vadd.f32 %v909_v33, %v719_v41  ;;  %v966_v53 = vmax.f32 %v908_v11, 0.0  ;;  %v1043_v59 = vpack.c.bf16 %v965_v56, %v963_v24  ;;  %v1042_v22 = vpack.c.bf16 %v964_v20, %v962_v60  ;;  %v2291_v41 = vld [vmem:[%s3684_s1 + $0x678] sm:$0xff] }
 0x414   :  { %v911_v6 = vpop.f32.mrf.mxu1 }
 0x415   :  { %v912_v2 = vadd.f32 %v911_v6, %v724_v40  ;;  %v967_v5 = vmax.f32 %v910_v1, 0.0  ;;  %v2285_v6 = vld [vmem:[%s3684_s1 + $0x648] sm:$0xff]  ;;  %v2292_v1 = vld [vmem:[%s3684_s1 + $0x680] sm:$0xff] }
 0x416   :  { %v913_v50 = vpop.f32.mrf.mxu1  ;;  %1136 = vmatpush1.bf16.msra.mxu0 %v1030_v37  ;;  %v2282_v37 = vld [vmem:[%s3684_s1 + $0x630] sm:$0xff] }
 0x417   :  { %1137 = vmatprep.subr.bf16.mxu0 %v1029_v39  ;;  %v914_v44 = vadd.f32 %v913_v50, %v724_v40  ;;  %v968_v55 = vmax.f32 %v912_v2, 0.0  ;;  %v2287_v39 = vld [vmem:[%s3684_s1 + $0x658] sm:$0xff]  ;;  %v1001_v63 = vpack.c.bf16 %v2282_v37, %v2280_v36  ;;  %v2284_v40 = vld [vmem:[%s3684_s1 + $0x640] sm:$0xff] }
 0x418   :  { %v917_v15 = vpop.f32.mrf.mxu1  ;;  %v1004_v50 = vpack.c.bf16 %v2287_v39, %v2285_v6  ;;  %v2299_v2 = vld [vmem:[%s3684_s1 + $0x6b8] sm:$0xff] }
 0x419   :  { %v918_v13 = vadd.f32 %v917_v15, %v729_v48  ;;  %v969_v0 = vmax.f32 %v914_v44, 0.0  ;;  %v1044_v26 = vpack.c.bf16 %v968_v55, %v966_v53  ;;  %v2289_v15 = vld [vmem:[%s3684_s1 + $0x668] sm:$0xff]  ;;  %v2288_v44 = vld [vmem:[%s3684_s1 + $0x660] sm:$0xff]  ;;  %v1010_v23 = vpack.c.bf16 %v2299_v2, %v2297_v12 }
 0x41a   :  { %v919_v43 = vpop.f32.mrf.mxu1  ;;  %1138 = vmatpush1.bf16.msra.mxu0 %v1028_v14  ;;  %v2286_v14 = vld [vmem:[%s3684_s1 + $0x650] sm:$0xff] }
 0x41b   :  { %1139 = vmatprep.subr.bf16.mxu0 %v2989_v49  ;;  %v920_v45 = vadd.f32 %v919_v43, %v729_v48  ;;  %v970_v57 = vmax.f32 %v918_v13, 0.0  ;;  %v1045_v27 = vpack.c.bf16 %v969_v0, %v967_v5  ;;  %v1003_v43 = vpack.c.bf16 %v2286_v14, %v2284_v40  ;;  %v2296_v0 = vld [vmem:[%s3684_s1 + $0x6a0] sm:$0xff] }
 0x41c   :  { %v921_v21 = vpop.f32.mrf.mxu1 }
 0x41d   :  { %v922_v47 = vadd.f32 %v921_v21, %v734_v31  ;;  %v971_v4 = vmax.f32 %v920_v45, 0.0  ;;  %v1006_v21 = vpack.c.bf16 %v2291_v41, %v2289_v15  ;;  %v2290_v45 = vld [vmem:[%s3684_s1 + $0x670] sm:$0xff] }
 0x41e   :  { %v923_v9 = vpop.f32.mrf.mxu1  ;;  %1140 = vmatpush1.bf16.msra.mxu0 %v2985_v46  ;;  %v704_v46 = vpop.permute.xlu0 %703  ;;  %v1005_v13 = vpack.c.bf16 %v2290_v45, %v2288_v44 }
 0x41f   :  { %v924_v16 = vadd.f32 %v923_v9, %v734_v31  ;;  %1141 = vmatprep.subr.bf16.mxu0 %v2981_v35  ;;  %v972_v10 = vmax.f32 %v922_v47, 0.0  ;;  %v894_v17 = vadd.f32 %v3020_v19, %v704_v46  ;;  %v892_v29 = vadd.f32 %v3016_v42, %v704_v46  ;;  %v2278_v42 = vld [vmem:[%s3684_s1 + $0x610] sm:$0xff]  ;;  %v2293_v47 = vld [vmem:[%s3684_s1 + $0x688] sm:$0xff] }
 0x420   :  { %v888_v19 = vadd.f32 %v3008_v30, %v699_v62  ;;  %v2281_v30 = vld [vmem:[%s3684_s1 + $0x628] sm:$0xff]  ;;  %v1008_v9 = vpack.c.bf16 %v2295_v7, %v2293_v47 }
 0x421   :  { %v973_v49 = vmax.f32 %v924_v16, 0.0  ;;  %v1046_v35 = vpack.c.bf16 %v972_v10, %v970_v57  ;;  %v961_v54 = vmax.f32 %v894_v17, 0.0  ;;  %v960_v58 = vmax.f32 %v892_v29, 0.0  ;;  %v2294_v16 = vld [vmem:[%s3684_s1 + $0x690] sm:$0xff]  ;;  %v1101_v29 = vpop.permute.xlu1 %1100 }
 0x422   :  { %1142 = vmatpush1.bf16.msra.mxu0 %v2979_v32  ;;  %v890_v32 = vadd.f32 %v3012_v38, %v699_v62  ;;  %v958_v18 = vmax.f32 %v888_v19, 0.0  ;;  %v2276_v38 = vld [vmem:[%s3684_s1 + $0x600] sm:$0xff]  ;;  %v1002_v48 = vpack.c.bf16 %v2283_v52, %v2281_v30  ;;  %v1007_v10 = vpack.c.bf16 %v2294_v16, %v2292_v1 }
 0x423   :  { %v1047_v8 = vpack.c.bf16 %v973_v49, %v971_v4  ;;  %v999_v34 = vpack.c.bf16 %v2278_v42, %v2276_v38  ;;  %v2298_v4 = vld [vmem:[%s3684_s1 + $0x6b0] sm:$0xff] }
 0x424   :  { %v959_v51 = vmax.f32 %v890_v32, 0.0  ;;  %v1040_v33 = vpack.c.bf16 %v960_v58, %v958_v18  ;;  %v1009_v49 = vpack.c.bf16 %v2298_v4, %v2296_v0  ;;  %v1106_v32 = vpop.permute.xlu0 %1105 }
 0x425   :  { %1151 = vmatprep.subr.bf16.mxu0 %v1047_v8  ;;  %v1091_v19 = vpop.permute.xlu1 %1090 }
 0x426   :  { %1152 = vmatpush2.bf16.msra.mxu0 %v1046_v35  ;;  %v1041_v31 = vpack.c.bf16 %v961_v54, %v959_v51 }
 0x427   :  { %1153 = vmatprep.subr.bf16.mxu0 %v1045_v27 }
 0x428   :  { %v1096_v54 = vpop.permute.xlu0 %1095 }
 0x42a   :  { %1154 = vmatpush2.bf16.msra.mxu0 %v1044_v26 }
 0x42b   :  { %1155 = vmatprep.subr.bf16.mxu0 %v1043_v59 }
 0x42c   :  { %v1086_v58 = vpop.permute.xlu0 %1085 }
 0x42e   :  { %1156 = vmatpush2.bf16.msra.mxu0 %v1042_v22 }
 0x42f   :  { %1157 = vmatprep.subr.bf16.mxu0 %v1041_v31  ;;  %v1081_v31 = vpop.permute.xlu1 %1080 }
 0x430   :  { %v1076_v36 = vpop.permute.xlu0 %1075 }
 0x432   :  { %1158 = vmatpush2.bf16.msra.mxu0 %v1040_v33 }
 0x433   :  { %v1071_v14 = vpop.permute.xlu1 %1070 }
 0x434   :  { %v1066_v16 = vpop.permute.xlu0 %1065 }
 0x435   :  { %1160 = vmatmul.mubr.bf16.vlgmr.msra.gmra.mxu0 %v999_v34 }
 0x436   :  { %2313 = vmatprep.mubr.msk.bf16.mxu0 %vm1108_vm6, %v1002_v48 }
 0x437   :  { %v1061_v0 = vpop.permute.xlu1 %1060 }
 0x43d   :  { %1170 = vmatmul.mubr.bf16.gmra.mxu0 %v1001_v63 }
 0x43e   :  { %2314 = vmatprep.mubr.msk.bf16.mxu0 %vm1108_vm6, %v1004_v50 }
 0x445   :  { %1180 = vmatmul.mubr.bf16.gmra.mxu0 %v1003_v43 }
 0x446   :  { %2315 = vmatprep.mubr.msk.bf16.mxu0 %vm1108_vm6, %v1006_v21 }
 0x44d   :  { %1190 = vmatmul.mubr.bf16.gmra.mxu0 %v1005_v13 }
 0x44e   :  { %2316 = vmatprep.mubr.msk.bf16.mxu0 %vm1108_vm6, %v1008_v9 }
 0x455   :  { %1200 = vmatmul.mubr.bf16.gmra.mxu0 %v1007_v10 }
 0x456   :  { %2317 = vmatprep.mubr.msk.bf16.mxu0 %vm1108_vm6, %v1010_v23 }
 0x45d   :  { %1210 = vmatmul.mubr.bf16.gmra.mxu0 %v1009_v49 }
 0x45e   :  { %1344 = vmatprep.mubr.bf16.mxu0 %v2473_v3 }
 0x4f5   :  { %v3129_v11 = vpop.f32.mrf.mxu0 }
 0x4f7   :  { %v3131_v57 = vpop.f32.mrf.mxu0 }
 0x4f9   :  { %v3133_v25 = vpop.f32.mrf.mxu0 }
 0x4fb   :  { %v3135_v5 = vpop.f32.mrf.mxu0 }
 0x4fd   :  { %v3137_v8 = vpop.f32.mrf.mxu0 }
 0x4ff   :  { %v3139_v46 = vpop.f32.mrf.mxu0 }
 0x501   :  { %v3141_v61 = vpop.f32.mrf.mxu0 }
 0x503   :  { %v1177_v55 = vpop.f32.mrf.mxu0 }
 0x505   :  { %v1181_v35 = vpop.f32.mrf.mxu0 }
 0x507   :  { %v1183_v17 = vpop.f32.mrf.mxu0 }
 0x508   :  { %v1184_v10 = vadd.f32 %v1183_v17, %v1071_v14 }
 0x509   :  { %v1185_v56 = vpop.f32.mrf.mxu0 }
 0x50a   :  { %v1186_v4 = vadd.f32 %v1185_v56, %v1076_v36 }
 0x50b   :  { %v1187_v27 = vpop.f32.mrf.mxu0 }
 0x50c   :  { %v1188_v13 = vadd.f32 %v1187_v27, %v1076_v36  ;;  %v1174_v27 = vadd.f32 %v3139_v46, %v1061_v0  ;;  %v1230_v17 = vmax.f32 %v1186_v4, 0.0  ;;  %v2320_v36 = vld [vmem:[%s3684_s1 + $0x7a0] sm:$0xff] }
 0x50d   :  { %v1191_v62 = vpop.f32.mrf.mxu0 }
 0x50e   :  { %v1192_v12 = vadd.f32 %v1191_v62, %v1081_v31  ;;  %v1056_v62 = vpop.permute.xlu0 %1055 }
 0x50f   :  { %v1193_v28 = vpop.f32.mrf.mxu0  ;;  %v1166_v46 = vadd.f32 %v3133_v25, %v1056_v62  ;;  %v2319_v25 = vld [vmem:[%s3684_s1 + $0x790] sm:$0xff] }
 0x510   :  { %v1194_v43 = vadd.f32 %v1193_v28, %v1081_v31 }
 0x511   :  { %v1195_v53 = vpop.f32.mrf.mxu0 }
 0x512   :  { %v1196_v45 = vadd.f32 %v1195_v53, %v1086_v58  ;;  %v1233_v23 = vmax.f32 %v1194_v43, 0.0 }
 0x513   :  { %v1197_v24 = vpop.f32.mrf.mxu0 }
 0x514   :  { %v1198_v39 = vadd.f32 %v1197_v24, %v1086_v58  ;;  %v1234_v49 = vmax.f32 %v1196_v45, 0.0  ;;  %v1231_v24 = vmax.f32 %v1188_v13, 0.0 }
 0x515   :  { %v1201_v20 = vpop.f32.mrf.mxu0 }
 0x516   :  { %v1202_v15 = vadd.f32 %v1201_v20, %v1091_v19  ;;  %v1235_v9 = vmax.f32 %v1198_v39, 0.0  ;;  %v1232_v20 = vmax.f32 %v1192_v12, 0.0  ;;  %v2322_v39 = vld [vmem:[%s3684_s1 + $0x7c0] sm:$0xff] }
 0x517   :  { %v1203_v26 = vpop.f32.mrf.mxu0 }
 0x518   :  { %v1204_v34 = vadd.f32 %v1203_v26, %v1091_v19  ;;  %v1236_v2 = vmax.f32 %v1202_v15, 0.0  ;;  %v1268_v53 = vpack.c.bf16 %v1235_v9, %v1233_v23  ;;  %v1229_v26 = vmax.f32 %v1184_v10, 0.0 }
 0x519   :  { %v1205_v59 = vpop.f32.mrf.mxu0  ;;  %v1168_v19 = vadd.f32 %v3135_v5, %v1056_v62 }
 0x51a   :  { %v1206_v37 = vadd.f32 %v1205_v59, %v1096_v54  ;;  %v1237_v21 = vmax.f32 %v1204_v34, 0.0  ;;  %v1267_v59 = vpack.c.bf16 %v1234_v49, %v1232_v20 }
 0x51b   :  { %v1207_v60 = vpop.f32.mrf.mxu0 }
 0x51c   :  { %v1208_v38 = vadd.f32 %v1207_v60, %v1096_v54  ;;  %v1238_v47 = vmax.f32 %v1206_v37, 0.0  ;;  %v1176_v54 = vadd.f32 %v3141_v61, %v1066_v16  ;;  %v1266_v60 = vpack.c.bf16 %v1231_v24, %v1229_v26  ;;  %v2321_v37 = vld [vmem:[%s3684_s1 + $0x7b0] sm:$0xff] }
 0x51d   :  { %v1211_v51 = vpop.f32.mrf.mxu0  ;;  %v1223_v61 = vmax.f32 %v1168_v19, 0.0 }
 0x51e   :  { %v1212_v52 = vadd.f32 %v1211_v51, %v1101_v29  ;;  %v1239_v63 = vmax.f32 %v1208_v38, 0.0  ;;  %v1269_v28 = vpack.c.bf16 %v1238_v47, %v1236_v2  ;;  %v1051_v51 = vpop.permute.xlu1 %1050  ;;  %v1226_v31 = vmax.f32 %v1176_v54, 0.0 }
 0x51f   :  { %v1213_v22 = vpop.f32.mrf.mxu0 }
 0x520   :  { %v1214_v42 = vadd.f32 %v1213_v22, %v1101_v29  ;;  %v1240_v41 = vmax.f32 %v1212_v52, 0.0  ;;  %v1270_v1 = vpack.c.bf16 %v1239_v63, %v1237_v21  ;;  %v1182_v29 = vadd.f32 %v1181_v35, %v1071_v14  ;;  %v2323_v63 = vld [vmem:[%s3684_s1 + $0x7d0] sm:$0xff] }
 0x521   :  { %v1215_v18 = vpop.f32.mrf.mxu0  ;;  %v1164_v35 = vadd.f32 %v3131_v57, %v1051_v51  ;;  %v1225_v22 = vmax.f32 %v1174_v27, 0.0  ;;  %v1222_v52 = vmax.f32 %v1166_v46, 0.0  ;;  %v2318_v57 = vld [vmem:[%s3684_s1 + $0x780] sm:$0xff] }
 0x522   :  { %v1216_v30 = vadd.f32 %v1215_v18, %v1106_v32  ;;  %v1241_v50 = vmax.f32 %v1214_v42, 0.0  ;;  %v1228_v58 = vmax.f32 %v1182_v29, 0.0  ;;  %v1162_v42 = vadd.f32 %v3129_v11, %v1051_v51  ;;  %v1296_v47 = vpop.permute.xlu1 %1295 }
 0x523   :  { %v1217_v33 = vpop.f32.mrf.mxu0  ;;  %v1251_v11 = vpack.c.bf16 %v2319_v25, %v2318_v57 }
 0x524   :  { %v1218_v48 = vadd.f32 %v1217_v33, %v1106_v32  ;;  %v1242_v6 = vmax.f32 %v1216_v30, 0.0  ;;  %v1178_v32 = vadd.f32 %v1177_v55, %v1066_v16  ;;  %v1172_v55 = vadd.f32 %v3137_v8, %v1061_v0 }
 0x525   :  { %v1265_v18 = vpack.c.bf16 %v1230_v17, %v1228_v58  ;;  %v1221_v30 = vmax.f32 %v1164_v35, 0.0  ;;  %v1220_v34 = vmax.f32 %v1162_v42, 0.0 }
 0x526   :  { %v1243_v40 = vmax.f32 %v1218_v48, 0.0  ;;  %v1271_v7 = vpack.c.bf16 %v1242_v6, %v1240_v41  ;;  %v1227_v56 = vmax.f32 %v1178_v32, 0.0  ;;  %v1224_v5 = vmax.f32 %v1172_v55, 0.0  ;;  %v1286_v16 = vpop.permute.xlu1 %1285 }
 0x527   :  { %v1262_v33 = vpack.c.bf16 %v1223_v61, %v1221_v30  ;;  %v1261_v48 = vpack.c.bf16 %v1222_v52, %v1220_v34  ;;  %v1252_v6 = vpack.c.bf16 %v2321_v37, %v2320_v36  ;;  %v2334_v30 = vld [vmem:[%s3684_s1 + $0x910] sm:$0xff] }
 0x528   :  { %v1272_v44 = vpack.c.bf16 %v1243_v40, %v1241_v50  ;;  %v1264_v38 = vpack.c.bf16 %v1227_v56, %v1225_v22  ;;  %v1263_v8 = vpack.c.bf16 %v1226_v31, %v1224_v5  ;;  %v1253_v50 = vpack.c.bf16 %v2323_v63, %v2322_v39  ;;  %v2333_v5 = vld [vmem:[%s3684_s1 + $0x900] sm:$0xff] }
 0x52a   :  { %1316 = vmatprep.subr.bf16.mxu0 %v1272_v44  ;;  %v1301_v44 = vpop.permute.xlu0 %1300  ;;  %v1276_v62 = vpop.permute.xlu1 %1275 }
 0x52b   :  { %1317 = vmatpush1.bf16.msra.mxu0 %v1271_v7 }
 0x52c   :  { %1318 = vmatprep.subr.bf16.mxu0 %v1270_v1 }
 0x52e   :  { %v1291_v9 = vpop.permute.xlu0 %1290  ;;  %v1416_v25 = vpop.permute.xlu1 %1415 }
 0x52f   :  { %1319 = vmatpush1.bf16.msra.mxu0 %v1269_v28 }
 0x530   :  { %1320 = vmatprep.subr.bf16.mxu0 %v1268_v53 }
 0x532   :  { %v1281_v32 = vpop.permute.xlu0 %1280  ;;  %v1411_v37 = vpop.permute.xlu1 %1410 }
 0x533   :  { %1321 = vmatpush1.bf16.msra.mxu0 %v1267_v59 }
 0x534   :  { %1322 = vmatprep.subr.bf16.mxu0 %v1266_v60 }
 0x537   :  { %1323 = vmatpush1.bf16.msra.mxu0 %v1265_v18 }
 0x538   :  { %1324 = vmatprep.subr.bf16.mxu0 %v1264_v38 }
 0x53b   :  { %1325 = vmatpush1.bf16.msra.mxu0 %v1263_v8  ;;  %v1391_v8 = vpack.c.bf16 %v2334_v30, %v2333_v5 }
 0x53c   :  { %1326 = vmatprep.subr.bf16.mxu0 %v1262_v33  ;;  %v2335_v33 = vld [vmem:[%s3684_s1 + $0x920] sm:$0xff] }
 0x53d   :  { %v1392_v34 = vpack.c.bf16 %v2335_v33, %v2335_v33 }
 0x53f   :  { %1327 = vmatpush1.bf16.msra.mxu0 %v1261_v48 }
 0x542   :  { %2330 = vmatmul.mubr.msk.bf16.vlgmr.msra.gmra.mxu0 %vm736_vm5, %v1251_v11 }
 0x543   :  { %1354 = vmatprep.mubr.bf16.mxu0 %v2473_v3 }
 0x54a   :  { %2331 = vmatmul.mubr.msk.bf16.gmra.mxu0 %vm736_vm5, %v1252_v6 }
 0x54b   :  { %1364 = vmatprep.mubr.bf16.mxu0 %v2473_v3 }
 0x552   :  { %2332 = vmatmul.mubr.msk.bf16.gmra.mxu0 %vm736_vm5, %v1253_v50  ;;  %v1406_v50 = vpop.permute.xlu0 %1405 }
 0x553   :  { %1543 = vmatprep.mubr.bf16.mxu0 %v2473_v3 }
 0x602   :  { %v1346_v40 = vpop.f32.mrf.mxu0 }
 0x603   :  { %v1347_v22 = vadd.f32 %v1346_v40, %v1276_v62 }
 0x604   :  { %v1348_v14 = vpop.f32.mrf.mxu0 }
 0x605   :  { %v1349_v59 = vadd.f32 %v1348_v14, %v1276_v62  ;;  %v1375_v42 = vmax.f32 %v1347_v22, 0.0  ;;  %v1647_v62 = vstv %s3213_s22  ;;  %v1763_v22 = vstv %s3231_s30  ;;  %s3395_s22 = sld [smem:[#allocation3 + $0x181]] }
 0x606   :  { %v1350_v15 = vpop.f32.mrf.mxu0 }
 0x607   :  { %v1351_v60 = vadd.f32 %v1350_v15, %v1281_v32  ;;  %v1376_v31 = vmax.f32 %v1349_v59, 0.0  ;;  %v1677_v59 = vstv %s3219_s25  ;;  %s3731_s25 = sld [smem:[#allocation24_spill]] }
 0x608   :  { %v1352_v41 = vpop.f32.mrf.mxu0 }
 0x609   :  { %v1353_v29 = vadd.f32 %v1352_v41, %v1281_v32  ;;  %v1377_v18 = vmax.f32 %v1351_v60, 0.0  ;;  %v1575_v32 = vstv %s3199_s16  ;;  %s3282_s16 = sld [smem:[#allocation3 + $0x109]]  ;;  %v1727_v60 = vstv %s3225_s2 }
 0x60a   :  { %v1356_v43 = vpop.f32.mrf.mxu0  ;;  %s3426_s2 = sld [smem:[#allocation3 + $0x186]] }
 0x60b   :  { %v1357_v54 = vadd.f32 %v1356_v43, %v1286_v16  ;;  %v1378_v58 = vmax.f32 %v1353_v29, 0.0  ;;  %v1397_v52 = vpack.c.bf16 %v1377_v18, %v1375_v42  ;;  %v1611_v29 = vstv %s3205_s19  ;;  %s3374_s19 = sld [smem:[#allocation3 + $0x10a]] }
 0x60c   :  { %v1358_v21 = vpop.f32.mrf.mxu0 }
 0x60d   :  { %v1359_v49 = vadd.f32 %v1358_v21, %v1286_v16  ;;  %v1379_v46 = vmax.f32 %v1357_v54, 0.0  ;;  %v1398_v38 = vpack.c.bf16 %v1378_v58, %v1376_v31  ;;  %v1653_v54 = vstv %s3215_s23  ;;  %s3406_s23 = sld [smem:[#allocation3 + $0x182]] }
 0x60e   :  { %v1360_v45 = vpop.f32.mrf.mxu0  ;;  %v1787_v31 = vstv %s3235_s0  ;;  %s3431_s0 = sld [smem:[#allocation3 + $0x187]] }
 0x60f   :  { %v1361_v24 = vadd.f32 %v1360_v45, %v1291_v9  ;;  %v1380_v19 = vmax.f32 %v1359_v49, 0.0  ;;  %v1559_v49 = vstv %s3195_s15  ;;  %s3276_s15 = sld [smem:[#allocation3 + $0x108]] }
 0x610   :  { %v1362_v7 = vpop.f32.mrf.mxu0 }
 0x611   :  { %v1363_v2 = vadd.f32 %v1362_v7, %v1291_v9  ;;  %v1381_v51 = vmax.f32 %v1361_v24, 0.0  ;;  %v1587_v24 = vstv %s3201_s17  ;;  %s3727_s17 = sld [smem:[#allocation21_spill]] }
 0x612   :  { %v1366_v13 = vpop.f32.mrf.mxu0 }
 0x613   :  { %v1367_v0 = vadd.f32 %v1366_v13, %v1296_v47  ;;  %v1382_v20 = vmax.f32 %v1363_v2, 0.0  ;;  %v1399_v61 = vpack.c.bf16 %v1381_v51, %v1379_v46  ;;  %v1739_v51 = vstv %s3227_s28  ;;  %s3436_s28 = sld [smem:[#allocation6 + $0x2]] }
 0x614   :  { %v1368_v1 = vpop.f32.mrf.mxu0  ;;  %v1775_v46 = vstv %s3233_s8  ;;  %s3645_s8 = sld [smem:[#allocation6 + $0x3]] }
 0x615   :  { %v1369_v10 = vadd.f32 %v1368_v1, %v1296_v47  ;;  %v1383_v17 = vmax.f32 %v1367_v0, 0.0  ;;  %v1400_v35 = vpack.c.bf16 %v1382_v20, %v1380_v19  ;;  %v1623_v20 = vstv %s3207_s20  ;;  %s3728_s20 = sld [smem:[#allocation20_spill]] }
 0x616   :  { %v1370_v12 = vpop.f32.mrf.mxu0  ;;  %v1703_v19 = vstv %s3221_s26  ;;  %s3413_s26 = sld [smem:[#allocation3 + $0x184]] }
 0x617   :  { %v1371_v23 = vadd.f32 %v1370_v12, %v1301_v44  ;;  %v1384_v27 = vmax.f32 %v1369_v10, 0.0  ;;  %v2341_v10 = vld [vmem:[%s3684_s1 + $0xa80] sm:$0xff]  ;;  %v1689_v30 = vstv %s3727_s17 }
 0x618   :  { %v1372_v4 = vpop.f32.mrf.mxu0 }
 0x619   :  { %v1373_v28 = vadd.f32 %v1372_v4, %v1301_v44  ;;  %v1385_v53 = vmax.f32 %v1371_v23, 0.0  ;;  %v2342_v23 = vld [vmem:[%s3684_s1 + $0xa90] sm:$0xf]  ;;  %s3209_s1 = sld [smem:[#allocation3 + $0x7]] }
 0x61a   :  { %v1484_v4 = vpack.c.bf16 %v2342_v23, %v2341_v10 }
 0x61b   :  { %v1386_v26 = vmax.f32 %v1373_v28, 0.0  ;;  %v1401_v55 = vpack.c.bf16 %v1385_v53, %v1383_v17  ;;  %v1563_v28 = vstv %s3197_s5  ;;  %v1599_v53 = vstv %s3203_s18  ;;  %s3726_s5 = sld [smem:[#allocation19_spill]] }
 0x61c   :  { %v1665_v17 = vstv %s3217_s24  ;;  %s3411_s24 = sld [smem:[#allocation3 + $0x183]] }
 0x61d   :  { %v1402_v56 = vpack.c.bf16 %v1386_v26, %v1384_v27  ;;  %v1699_v26 = vstv %s3211_s21  ;;  %s3729_s21 = sld [smem:[#allocation22_spill]] }
 0x61f   :  { %1434 = vmatprep.subr.bf16.mxu1 %v1402_v56  ;;  %3716 = sst [smem:[#allocation15_spill]] %s3209_s1  ;;  %v1635_v27 = vstv %s3209_s1  ;;  %v1715_v56 = vstv %s3223_s27 }
 0x620   :  { %1435 = vmatpush1.bf16.msra.mxu1 %v1401_v55  ;;  %s3288_s1 = sld [smem:[#allocation8 + $0x1]]  ;;  %v1495_v55 = vpop.permute.xlu0 %1494 }
 0x621   :  { %1436 = vmatprep.subr.bf16.mxu1 %v1400_v35  ;;  %v1751_v35 = vstv %s3229_s29  ;;  %v1817_v42 = vstv %s3726_s5  ;;  %s3415_s27 = sld [smem:[#allocation3 + $0x185]] }
 0x622   :  { %s3438_s29 = sld [smem:[#allocation3 + $0x188]] }
 0x623   :  { %v1857_v33 = vstv %s3729_s21  ;;  %s3522_s21 = sld [smem:[#allocation3 + $0x18b]] }
 0x624   :  { %1437 = vmatpush1.bf16.msra.mxu1 %v1399_v61  ;;  %v1793_v61 = vstv %s3237_s9  ;;  %s2399_s9 = sld [smem:[#allocation8 + $0x3]] }
 0x625   :  { %1438 = vmatprep.subr.bf16.mxu1 %v1398_v38  ;;  %v1805_v38 = vstv %s3239_s4 }
 0x626   :  { %3730 = sst [smem:[#allocation19_spill]] %s3288_s1 }
 0x628   :  { %1439 = vmatpush1.bf16.msra.mxu1 %v1397_v52  ;;  %v1841_v52 = vstv %s3728_s20  ;;  %s3517_s20 = sld [smem:[#allocation3 + $0x18a]] }
 0x62b   :  { %2339 = vmatmul.mubr.msk.bf16.vlgmr.msra.gmra.mxu1 %vm406_vm4, %v1391_v8  ;;  %v1845_v8 = vstv %s3247_s12 }
 0x62c   :  { %1466 = vmatprep.mubr.bf16.mxu1 %v2473_v3 }
 0x633   :  { %2340 = vmatmul.mubr.msk.bf16.gmra.mxu1 %vm406_vm4, %v1392_v34 }
 0x6eb   :  { %v1458_v57 = vpop.f32.mrf.mxu1 }
 0x6ec   :  { %v1459_v47 = vadd.f32 %v1458_v57, %v1406_v50 }
 0x6ed   :  { %v1460_v48 = vpop.f32.mrf.mxu1 }
 0x6ee   :  { %v1461_v14 = vadd.f32 %v1460_v48, %v1406_v50  ;;  %v1475_v2 = vmax.f32 %v1459_v47, 0.0  ;;  %v1869_v48 = vstv %s3251_s14 }
 0x6ef   :  { %v1462_v11 = vpop.f32.mrf.mxu1 }
 0x6f0   :  { %v1463_v41 = vadd.f32 %v1462_v11, %v1411_v37  ;;  %v1476_v13 = vmax.f32 %v1461_v14, 0.0  ;;  %v1829_v14 = vstv %s3270_s6  ;;  %s3634_s6 = sld [smem:[#allocation8 + $0x2]] }
 0x6f1   :  { %v1464_v36 = vpop.f32.mrf.mxu1 }
 0x6f2   :  { %v1465_v39 = vadd.f32 %v1464_v36, %v1411_v37  ;;  %v1477_v1 = vmax.f32 %v1463_v41, 0.0  ;;  %v1881_v36 = vstv %s3731_s25  ;;  %v1893_v37 = vstv %s3257_s3 }
 0x6f3   :  { %v1468_v6 = vpop.f32.mrf.mxu1 }
 0x6f4   :  { %v1469_v63 = vadd.f32 %v1468_v6, %v1416_v25  ;;  %v1478_v21 = vmax.f32 %v1465_v39, 0.0  ;;  %v1488_v0 = vpack.c.bf16 %v1477_v1, %v1475_v2  ;;  %v1905_v6 = vstv %s3259_s10  ;;  %s3740_s10 = sld [smem:[#allocation25_spill]] }
 0x6f5   :  { %v1470_v40 = vpop.f32.mrf.mxu1  ;;  %v1917_v39 = vstv %s3261_s11  ;;  %s2475_s11 = smov [#allocation9]  }
 0x6f6   :  { %v1479_v3 = vmax.f32 %v1469_v63, 0.0  ;;  %v1471_v15 = vadd.f32 %v1470_v40, %v1416_v25  ;;  %v1489_v16 = vpack.c.bf16 %v1478_v21, %v1476_v13  ;;  %v1695_v25 = vstv %s3253_s7  ;;  %v1500_v63 = vpop.permute.xlu1 %1499  ;;  %s3443_s7 = sld [smem:[#allocation3 + $0x189]]  ;;  %s2157_s12 = sshll.u32 %s2475_s11, 4  ;;  %s2158_s12 = int_to_ptr.vmem [resolvable:$true] %s2157_s12 }
 0x6f7   :  { %v1472_v43 = vpop.f32.mrf.mxu1  ;;  %v1929_v21 = vstv %s3276_s15  ;;  %v1835_v13 = vstv %s3288_s1  ;;  %s3384_s1 = sld [smem:[#allocation3 + $0x10b]]  ;;  %p2449_p2 = scmp.lt.s32.totalorder %s2158_s12, %s2158_s12 }
 0x6f8   :  { %v1490_v44 = vpack.c.bf16 %v1479_v3, %v1479_v3  ;;  %v1480_v45 = vmax.f32 %v1471_v15, 0.0  ;;  %v1983_v3 = vstv %s3264_s13  ;;  %s2444_s13 = scalar_lea.vmem %s2158_s12, 32 }
 0x6f9   :  { %v1473_v7 = vpop.f32.mrf.mxu1  ;;  %p2445_p1 = scmp.ne.s32.totalorder %s2158_s12, %s2444_s13  ;;  %p2450_p3 = scmp.lt.s32.totalorder %s2444_s13, %s2444_s13 }
 0x6fa   :  { %v1491_v9 = vpack.c.bf16 %v1480_v45, %v1480_v45  ;;  %v1506_v12 = vsel %vm226_vm2, %v1490_v44, 0  ;;  %v1935_v44 = vstv %s3282_s16 }
 0x6fb   :  { %p2451_p4 = por %p2450_p3, %p2449_p2 }
 0x6fc   :  { %2345 = vmatprep.subr.msk.bf16.mxu0 %vm226_vm2, %v1491_v9 }
 0x6fd   :  { %1524 = vmatpush1.bf16.msra.mxu0 %v1506_v12  ;;  %p2452_p5 = pnand %p2451_p4, %p2445_p1 }
 0x6fe   :  { %1525 = vmatprep.subr.bf16.mxu0 %v1489_v16 }
 0x701   :  { %1526 = vmatpush1.bf16.msra.mxu0 %v1488_v0 }
 0x704   :  { %2346 = vmatmul.mubr.msk.bf16.vlgmr.msra.gmra.mxu0 %vm216_vm3, %v1484_v4 }
 0x7c4   :  { %v1545_v58 = vpop.f32.mrf.mxu0 }
 0x7c5   :  { %v1546_v18 = vadd.f32 %v1545_v58, %v1495_v55 }
 0x7c6   :  { %v1547_v5 = vpop.f32.mrf.mxu0 }
 0x7c7   :  { %v3301_v34 = vmax.f32 %v1546_v18, 0.0  ;;  %v1548_v57 = vadd.f32 %v1547_v5, %v1495_v55 }
 0x7c8   :  { %v1549_v11 = vpop.f32.mrf.mxu0 }
 0x7c9   :  { %v3309_v50 = vmax.f32 %v1548_v57, 0.0  ;;  %v1564_v40 = vmul.f32 %v1563_v28, %v3301_v34  ;;  %v1550_v15 = vadd.f32 %v1549_v11, %v1500_v63  ;;  %v1576_v43 = vmul.f32 %v1575_v32, %v3301_v34 }
 0x7ca   :  { %v1551_v41 = vpop.f32.mrf.mxu0  ;;  %v1560_v47 = vmul.f32 %v1559_v49, %v3301_v34  ;;  %v1588_v16 = vmul.f32 %v1587_v24, %v3301_v34  ;;  %v1600_v12 = vmul.f32 %v1599_v53, %v3301_v34  ;;  %v1612_v0 = vmul.f32 %v1611_v29, %v3301_v34 }
 0x7cb   :  { %v1552_v45 = vadd.f32 %v1551_v41, %v1500_v63  ;;  %v1565_v7 = vmul.f32 %v1563_v28, %v3309_v50  ;;  %v1568_v9 = vrot.slane %v1564_v40, 1  ;;  %v1577_v1 = vmul.f32 %v1575_v32, %v3309_v50 }
 0x7cc   :  { %v1561_v2 = vmul.f32 %v1559_v49, %v3309_v50  ;;  %v1589_v23 = vmul.f32 %v1587_v24, %v3309_v50  ;;  %v3334_v4 = vmax.f32 %v1550_v15, 0.0  ;;  %v1580_v32 = vrot.slane %v1576_v43, 2 }
 0x7cd   :  { %v1569_v10 = vrot.slane %v1565_v7, 1  ;;  %v1572_v28 = vadd.f32 %v1568_v9, %v1560_v47  ;;  %v1601_v55 = vmul.f32 %v1599_v53, %v3309_v50  ;;  %v3339_v58 = vmax.f32 %v1552_v45, 0.0 }
 0x7ce   :  { %v1581_v5 = vrot.slane %v1577_v1, 2  ;;  %v1613_v49 = vmul.f32 %v1611_v29, %v3309_v50  ;;  %v1592_v57 = vrot.slane %v1588_v16, 3  ;;  %v1624_v11 = vmul.f32 %v1623_v20, %v3301_v34 }
 0x7cf   :  { %v1573_v18 = vadd.f32 %v1569_v10, %v1561_v2  ;;  %v1584_v24 = vadd.f32 %v1580_v32, %v1572_v28  ;;  %v1625_v63 = vmul.f32 %v1623_v20, %v3309_v50  ;;  %v1593_v53 = vrot.slane %v1589_v23, 3 }
 0x7d0   :  { %v1636_v15 = vmul.f32 %v1635_v27, %v3301_v34  ;;  %v1637_v41 = vmul.f32 %v1635_v27, %v3309_v50  ;;  %v1604_v43 = vrot.slane %v1600_v12, 4  ;;  %v1605_v45 = vrot.slane %v1601_v55, 4 }
 0x7d1   :  { %v1585_v40 = vadd.f32 %v1581_v5, %v1573_v18  ;;  %v1596_v29 = vadd.f32 %v1592_v57, %v1584_v24  ;;  %v1616_v47 = vrot.slane %v1612_v0, 5  ;;  %v1617_v9 = vrot.slane %v1613_v49, 5 }
 0x7d2   :  { %v1648_v20 = vmul.f32 %v1647_v62, %v3334_v4  ;;  %v1654_v1 = vmul.f32 %v1653_v54, %v3334_v4  ;;  %v1628_v2 = vrot.slane %v1624_v11, 6  ;;  %v1629_v27 = vrot.slane %v1625_v63, 6 }
 0x7d3   :  { %v1597_v7 = vadd.f32 %v1593_v53, %v1585_v40  ;;  %v1608_v16 = vadd.f32 %v1604_v43, %v1596_v29  ;;  %v1655_v12 = vmul.f32 %v1653_v54, %v3339_v58  ;;  %v1640_v23 = vrot.slane %v1636_v15, 7 }
 0x7d4   :  { %v1641_v0 = vrot.slane %v1637_v41, 7  ;;  %v1649_v28 = vmul.f32 %v1647_v62, %v3339_v58  ;;  %v1658_v55 = vrot.slane %v1654_v1, 1  ;;  %v1666_v18 = vmul.f32 %v1665_v17, %v3334_v4 }
 0x7d5   :  { %v1609_v10 = vadd.f32 %v1605_v45, %v1597_v7  ;;  %v1620_v32 = vadd.f32 %v1616_v47, %v1608_v16  ;;  %v1667_v54 = vmul.f32 %v1665_v17, %v3339_v58  ;;  %v1659_v49 = vrot.slane %v1655_v12, 1 }
 0x7d6   :  { %v3379_v24 = vmul.f32 %v1677_v59, %v3334_v4  ;;  %v1700_v62 = vmul.f32 %v1699_v26, %v3301_v34  ;;  %v1701_v11 = vmul.f32 %v1699_v26, %v3309_v50  ;;  %v1704_v17 = vmul.f32 %v1703_v19, %v3301_v34 }
 0x7d7   :  { %v1621_v5 = vadd.f32 %v1617_v9, %v1609_v10  ;;  %v1632_v57 = vadd.f32 %v1628_v2, %v1620_v32  ;;  %v1705_v63 = vmul.f32 %v1703_v19, %v3309_v50  ;;  %v1716_v53 = vmul.f32 %v1715_v56, %v3301_v34 }
 0x7d8   :  { %v1717_v15 = vmul.f32 %v1715_v56, %v3309_v50  ;;  %v1728_v41 = vmul.f32 %v1727_v60, %v3301_v34  ;;  %v1708_v29 = vrot.slane %v1704_v17, 1  ;;  %v1729_v19 = vmul.f32 %v1727_v60, %v3309_v50 }
 0x7d9   :  { %v1633_v40 = vadd.f32 %v1629_v27, %v1621_v5  ;;  %v1644_v26 = vadd.f32 %v1640_v23, %v1632_v57  ;;  %v1709_v43 = vrot.slane %v1705_v63, 1  ;;  %v1720_v47 = vrot.slane %v1716_v53, 2 }
 0x7da   :  { %v1721_v7 = vrot.slane %v1717_v15, 2  ;;  %v1732_v56 = vrot.slane %v1728_v41, 3  ;;  %v1712_v1 = vadd.f32 %v1708_v29, %v1700_v62  ;;  %v1733_v2 = vrot.slane %v1729_v19, 3 }
 0x7db   :  { %v1645_v45 = vadd.f32 %v1641_v0, %v1633_v40  ;;  %v1650_v9 = vadd.f32 %v1648_v20, %v1644_v26  ;;  %v1713_v16 = vadd.f32 %v1709_v43, %v1701_v11  ;;  %v1740_v60 = vmul.f32 %v1739_v51, %v3301_v34 }
 0x7dc   :  { %v1741_v12 = vmul.f32 %v1739_v51, %v3309_v50  ;;  %v1752_v10 = vmul.f32 %v1751_v35, %v3301_v34  ;;  %v1724_v20 = vadd.f32 %v1720_v47, %v1712_v1  ;;  %v1753_v32 = vmul.f32 %v1751_v35, %v3309_v50 }
 0x7dd   :  { %v1651_v27 = vadd.f32 %v1649_v28, %v1645_v45  ;;  %v1662_v23 = vadd.f32 %v1658_v55, %v1650_v9  ;;  %v1725_v0 = vadd.f32 %v1721_v7, %v1713_v16  ;;  %v1670_v5 = vrot.slane %v1666_v18, 2 }
 0x7de   :  { %v1671_v62 = vrot.slane %v1667_v54, 2  ;;  %v1679_v51 = vmul.f32 %v1677_v59, %v3339_v58  ;;  %v1736_v57 = vadd.f32 %v1732_v56, %v1724_v20  ;;  %v1744_v11 = vrot.slane %v1740_v60, 4 }
 0x7df   :  { %v1663_v28 = vadd.f32 %v1659_v49, %v1651_v27  ;;  %v1737_v55 = vadd.f32 %v1733_v2, %v1725_v0  ;;  %v1745_v17 = vrot.slane %v1741_v12, 4  ;;  %v1674_v35 = vadd.f32 %v1670_v5, %v1662_v23 }
 0x7e0   :  { %v1756_v63 = vrot.slane %v1752_v10, 5  ;;  %v1757_v49 = vrot.slane %v1753_v32, 5  ;;  %v1764_v18 = vmul.f32 %v1763_v22, %v3301_v34  ;;  %v1748_v54 = vadd.f32 %v1744_v11, %v1736_v57 }
 0x7e1   :  { %v1675_v59 = vadd.f32 %v1671_v62, %v1663_v28  ;;  %v1749_v40 = vadd.f32 %v1745_v17, %v1737_v55  ;;  %v1765_v53 = vmul.f32 %v1763_v22, %v3309_v50  ;;  %v1682_v15 = vrot.slane %v3379_v24, 3 }
 0x7e2   :  { %v1683_v41 = vrot.slane %v1679_v51, 3  ;;  %v1947_v26 = vstv %s3374_s19  ;;  %v1959_v29 = vstv %s3384_s1  ;;  %v1760_v43 = vadd.f32 %v1756_v63, %v1748_v54 }
 0x7e3   :  { %v1761_v19 = vadd.f32 %v1757_v49, %v1749_v40  ;;  %v1768_v45 = vrot.slane %v1764_v18, 6  ;;  %v1776_v47 = vmul.f32 %v1775_v46, %v3301_v34  ;;  %v1686_v7 = vadd.f32 %v1682_v15, %v1674_v35 }
 0x7e4   :  { %v1777_v22 = vmul.f32 %v1775_v46, %v3309_v50  ;;  %v1987_v24 = vstv %s3395_s22  ;;  %v1999_v56 = vstv %s3406_s23  ;;  %v1687_v9 = vadd.f32 %v1683_v41, %v1675_v59 }
 0x7e5   :  { %v1769_v1 = vrot.slane %v1765_v53, 6  ;;  %v1772_v16 = vadd.f32 %v1768_v45, %v1760_v43  ;;  %v2011_v2 = vstv %s3411_s24  ;;  %v1794_v27 = vmul.f32 %v1793_v61, %v3334_v4 }
 0x7e6   :  { %v2023_v60 = vstv %s3413_s26  ;;  %v2035_v12 = vstv %s3415_s27  ;;  %v2047_v10 = vstv %s3426_s2  ;;  %v1780_v23 = vrot.slane %v1776_v47, 7 }
 0x7e7   :  { %v1773_v46 = vadd.f32 %v1769_v1, %v1761_v19  ;;  %v1971_v20 = vstv %s3436_s28  ;;  %v2059_v0 = vstv %s3431_s0  ;;  %v3470_v32 = vadd.f32 %v1689_v30, %v1686_v7 }
 0x7e8   :  { %v1781_v28 = vrot.slane %v1777_v22, 7  ;;  %v2071_v5 = vstv %s3438_s29  ;;  %v2077_v62 = vstv %s3443_s7  ;;  %v3476_v51 = vadd.f32 %v1689_v30, %v1687_v9 }
 0x7e9   :  { %v1784_v57 = vadd.f32 %v1780_v23, %v1772_v16  ;;  %v1788_v55 = vmul.f32 %v1787_v31, %v3334_v4  ;;  %v1789_v11 = vmul.f32 %v1787_v31, %v3339_v58  ;;  %v1795_v17 = vmul.f32 %v1793_v61, %v3339_v58 }
 0x7ea   :  { %v1798_v35 = vrot.slane %v1794_v27, 1  ;;  %v1846_v63 = vmul.f32 %v1845_v8, %v3301_v34  ;;  %v1847_v30 = vmul.f32 %v1845_v8, %v3309_v50  ;;  %v1785_v49 = vadd.f32 %v1781_v28, %v1773_v46 }
 0x7eb   :  { %v1842_v18 = vmul.f32 %v1841_v52, %v3301_v34  ;;  %v1843_v59 = vmul.f32 %v1841_v52, %v3309_v50  ;;  %v1858_v31 = vmul.f32 %v1857_v33, %v3301_v34  ;;  %v1859_v40 = vmul.f32 %v1857_v33, %v3309_v50 }
 0x7ec   :  { %v1850_v54 = vrot.slane %v1846_v63, 1  ;;  %v1851_v61 = vrot.slane %v1847_v30, 1  ;;  %v1870_v53 = vmul.f32 %v1869_v48, %v3301_v34  ;;  %v1790_v8 = vadd.f32 %v1788_v55, %v1784_v57 }
 0x7ed   :  { %v1806_v15 = vmul.f32 %v1805_v38, %v3334_v4  ;;  %v1807_v52 = vmul.f32 %v1805_v38, %v3339_v58  ;;  %v1871_v41 = vmul.f32 %v1869_v48, %v3309_v50  ;;  %v1862_v45 = vrot.slane %v1858_v31, 2 }
 0x7ee   :  { %v1854_v43 = vadd.f32 %v1850_v54, %v1842_v18  ;;  %v1855_v19 = vadd.f32 %v1851_v61, %v1843_v59  ;;  %v1863_v33 = vrot.slane %v1859_v40, 2  ;;  %v1791_v47 = vadd.f32 %v1789_v11, %v1785_v49 }
 0x7ef   :  { %v1874_v7 = vrot.slane %v1870_v53, 3  ;;  %v1875_v22 = vrot.slane %v1871_v41, 3  ;;  %v1882_v9 = vmul.f32 %v1881_v36, %v3301_v34  ;;  %v1883_v48 = vmul.f32 %v1881_v36, %v3309_v50 }
 0x7f0   :  { %v1866_v38 = vadd.f32 %v1862_v45, %v1854_v43  ;;  %v1867_v1 = vadd.f32 %v1863_v33, %v1855_v19  ;;  %v1894_v16 = vmul.f32 %v1893_v37, %v3301_v34  ;;  %v1799_v27 = vrot.slane %v1795_v17, 1 }
 0x7f1   :  { %v1802_v46 = vadd.f32 %v1798_v35, %v1790_v8  ;;  %v1810_v23 = vrot.slane %v1806_v15, 2  ;;  %v1895_v28 = vmul.f32 %v1893_v37, %v3309_v50  ;;  %v1886_v11 = vrot.slane %v1882_v9, 4 }
 0x7f2   :  { %v1878_v57 = vadd.f32 %v1874_v7, %v1866_v38  ;;  %v1879_v55 = vadd.f32 %v1875_v22, %v1867_v1  ;;  %v1887_v63 = vrot.slane %v1883_v48, 4  ;;  %v1803_v30 = vadd.f32 %v1799_v27, %v1791_v47 }
 0x7f3   :  { %v1898_v36 = vrot.slane %v1894_v16, 5  ;;  %v1899_v49 = vrot.slane %v1895_v28, 5  ;;  %v1906_v18 = vmul.f32 %v1905_v6, %v3301_v34  ;;  %v1907_v59 = vmul.f32 %v1905_v6, %v3309_v50 }
 0x7f4   :  { %v1890_v17 = vadd.f32 %v1886_v11, %v1878_v57  ;;  %v1891_v35 = vadd.f32 %v1887_v63, %v1879_v55  ;;  %v1918_v37 = vmul.f32 %v1917_v39, %v3301_v34  ;;  %v1811_v31 = vrot.slane %v1807_v52, 2 }
 0x7f5   :  { %v1818_v54 = vmul.f32 %v1817_v42, %v3334_v4  ;;  %v1819_v61 = vmul.f32 %v1817_v42, %v3339_v58  ;;  %v1919_v40 = vmul.f32 %v1917_v39, %v3309_v50  ;;  %v1910_v15 = vrot.slane %v1906_v18, 6 }
 0x7f6   :  { %v1902_v53 = vadd.f32 %v1898_v36, %v1890_v17  ;;  %v1903_v8 = vadd.f32 %v1899_v49, %v1891_v35  ;;  %v1911_v41 = vrot.slane %v1907_v59, 6  ;;  %v1814_v6 = vadd.f32 %v1810_v23, %v1802_v46 }
 0x7f7   :  { %v1815_v43 = vadd.f32 %v1811_v31, %v1803_v30  ;;  %v2089_v19 = vstv %s3517_s20  ;;  %v2101_v52 = vstv %s3522_s21  ;;  %v1922_v47 = vrot.slane %v1918_v37, 7 }
 0x7f8   :  { %v1914_v45 = vadd.f32 %v1910_v15, %v1902_v53  ;;  %v1915_v33 = vadd.f32 %v1911_v41, %v1903_v8  ;;  %v1923_v42 = vrot.slane %v1919_v40, 7  ;;  %v1692_v39 = vmax.f32 %v3470_v32, 0.0 }
 0x7f9   :  { %v1822_v7 = vrot.slane %v1818_v54, 3  ;;  %v1823_v22 = vrot.slane %v1819_v61, 3  ;;  %v1936_v9 = vmul.f32 %v1935_v44, %v3334_v4  ;;  %v1693_v38 = vmax.f32 %v3476_v51, 0.0 }
 0x7fa   :  { %v1926_v1 = vadd.f32 %v1922_v47, %v1914_v45  ;;  %v1927_v48 = vadd.f32 %v1923_v42, %v1915_v33  ;;  %v1930_v16 = vmul.f32 %v1929_v21, %v3334_v4  ;;  %v1931_v23 = vmul.f32 %v1929_v21, %v3339_v58 }
 0x7fb   :  { %v1826_v27 = vadd.f32 %v1822_v7, %v1814_v6  ;;  %v1827_v46 = vadd.f32 %v1823_v22, %v1815_v43  ;;  %v1937_v28 = vmul.f32 %v1935_v44, %v3339_v58  ;;  %v1948_v55 = vmul.f32 %v1947_v26, %v3334_v4 }
 0x7fc   :  { %v1932_v57 = vadd.f32 %v1930_v16, %v1926_v1  ;;  %v1949_v11 = vmul.f32 %v1947_v26, %v3339_v58  ;;  %v1960_v63 = vmul.f32 %v1959_v29, %v3334_v4  ;;  %v1940_v30 = vrot.slane %v1936_v9, 1 }
 0x7fd   :  { %v1988_v36 = vmul.f32 %v1987_v24, %v3301_v34  ;;  %v1989_v21 = vmul.f32 %v1987_v24, %v3309_v50  ;;  %v2000_v44 = vmul.f32 %v1999_v56, %v3301_v34  ;;  %v1933_v49 = vadd.f32 %v1931_v23, %v1927_v48 }
 0x7fe   :  { %v1984_v18 = vmul.f32 %v1983_v3, %v3301_v34  ;;  %v2001_v26 = vmul.f32 %v1999_v56, %v3309_v50  ;;  %v2012_v17 = vmul.f32 %v2011_v2, %v3301_v34  ;;  %v1985_v35 = vmul.f32 %v1983_v3, %v3309_v50 }
 0x7ff   :  { %v1992_v24 = vrot.slane %v1988_v36, 1  ;;  %v1993_v59 = vrot.slane %v1989_v21, 1  ;;  %v2013_v37 = vmul.f32 %v2011_v2, %v3309_v50  ;;  %v1941_v31 = vrot.slane %v1937_v28, 1 }
 0x800   :  { %v1944_v54 = vadd.f32 %v1940_v30, %v1932_v57  ;;  %v1952_v61 = vrot.slane %v1948_v55, 2  ;;  %v2004_v40 = vrot.slane %v2000_v44, 2  ;;  %v2005_v8 = vrot.slane %v2001_v26, 2 }
 0x801   :  { %v1996_v56 = vadd.f32 %v1992_v24, %v1984_v18  ;;  %v1997_v53 = vadd.f32 %v1993_v59, %v1985_v35  ;;  %v2024_v15 = vmul.f32 %v2023_v60, %v3301_v34  ;;  %v1945_v41 = vadd.f32 %v1941_v31, %v1933_v49 }
 0x802   :  { %v2016_v3 = vrot.slane %v2012_v17, 3  ;;  %v2025_v6 = vmul.f32 %v2023_v60, %v3309_v50  ;;  %v2036_v2 = vmul.f32 %v2035_v12, %v3301_v34  ;;  %v2017_v33 = vrot.slane %v2013_v37, 3 }
 0x803   :  { %v2008_v43 = vadd.f32 %v2004_v40, %v1996_v56  ;;  %v2009_v45 = vadd.f32 %v2005_v8, %v1997_v53  ;;  %v2037_v47 = vmul.f32 %v2035_v12, %v3309_v50  ;;  %v1953_v42 = vrot.slane %v1949_v11, 2 }
 0x804   :  { %v1956_v7 = vadd.f32 %v1952_v61, %v1944_v54  ;;  %v1961_v22 = vmul.f32 %v1959_v29, %v3339_v58  ;;  %v2028_v60 = vrot.slane %v2024_v15, 4  ;;  %v2029_v48 = vrot.slane %v2025_v6, 4 }
 0x805   :  { %v2020_v9 = vadd.f32 %v2016_v3, %v2008_v43  ;;  %v2021_v1 = vadd.f32 %v2017_v33, %v2009_v45  ;;  %v2048_v16 = vmul.f32 %v2047_v10, %v3301_v34  ;;  %v1957_v23 = vadd.f32 %v1953_v42, %v1945_v41 }
 0x806   :  { %v2040_v28 = vrot.slane %v2036_v2, 5  ;;  %v2049_v12 = vmul.f32 %v2047_v10, %v3309_v50  ;;  %v2060_v57 = vmul.f32 %v2059_v0, %v3301_v34  ;;  %v2041_v30 = vrot.slane %v2037_v47, 5 }
 0x807   :  { %v2032_v55 = vadd.f32 %v2028_v60, %v2020_v9  ;;  %v2033_v11 = vadd.f32 %v2029_v48, %v2021_v1  ;;  %v2061_v29 = vmul.f32 %v2059_v0, %v3309_v50  ;;  %v1830_v36 = vadd.f32 %v1829_v14, %v1826_v27 }
 0x808   :  { %v1831_v21 = vadd.f32 %v1829_v14, %v1827_v46  ;;  %v1964_v44 = vrot.slane %v1960_v63, 3  ;;  %v1965_v49 = vrot.slane %v1961_v22, 3  ;;  %v2052_v26 = vrot.slane %v2048_v16, 6 }
 0x809   :  { %v2044_v18 = vadd.f32 %v2040_v28, %v2032_v55  ;;  %v2045_v10 = vadd.f32 %v2041_v30, %v2033_v11  ;;  %v2053_v34 = vrot.slane %v2049_v12, 6  ;;  %v2064_v24 = vrot.slane %v2060_v57, 7 }
 0x80a   :  { %v1968_v17 = vadd.f32 %v1964_v44, %v1956_v7  ;;  %v1969_v35 = vadd.f32 %v1965_v49, %v1957_v23  ;;  %v2078_v50 = vmul.f32 %v2077_v62, %v3334_v4  ;;  %v2065_v27 = vrot.slane %v2061_v29, 7 }
 0x80b   :  { %v2056_v14 = vadd.f32 %v2052_v26, %v2044_v18  ;;  %v2057_v0 = vadd.f32 %v2053_v34, %v2045_v10  ;;  %v2079_v46 = vmul.f32 %v2077_v62, %v3339_v58  ;;  %v1832_v63 = vmax.f32 %v1830_v36, 0.0 }
 0x80c   :  { %v1833_v59 = vmax.f32 %v1831_v21, 0.0  ;;  %v2072_v37 = vmul.f32 %v2071_v5, %v3334_v4  ;;  %v2073_v31 = vmul.f32 %v2071_v5, %v3339_v58  ;;  %v2090_v62 = vmul.f32 %v2089_v19, %v3334_v4 }
 0x80d   :  { %v2068_v54 = vadd.f32 %v2064_v24, %v2056_v14  ;;  %v2069_v61 = vadd.f32 %v2065_v27, %v2057_v0  ;;  %v2091_v40 = vmul.f32 %v2089_v19, %v3339_v58  ;;  %v1972_v56 = vadd.f32 %v1971_v20, %v1968_v17 }
 0x80e   :  { %v1973_v53 = vadd.f32 %v1971_v20, %v1969_v35  ;;  %v2082_v8 = vrot.slane %v2078_v50, 1  ;;  %v2102_v5 = vmul.f32 %v2101_v52, %v3334_v4  ;;  %v2083_v3 = vrot.slane %v2079_v46, 1 }
 0x80f   :  { %v2074_v15 = vadd.f32 %v2072_v37, %v2068_v54  ;;  %v2075_v41 = vadd.f32 %v2073_v31, %v2069_v61  ;;  %v2103_v6 = vmul.f32 %v2101_v52, %v3339_v58  ;;  %v1696_v2 = vmul.f32 %v1695_v25, %v1692_v39 }
 0x810   :  { %v1697_v20 = vmul.f32 %v1695_v25, %v1693_v38  ;;  %v1836_v19 = vmul.f32 %v1835_v13, %v1832_v63  ;;  %v1837_v4 = vmul.f32 %v1835_v13, %v1833_v59  ;;  %v2094_v33 = vrot.slane %v2090_v62, 2 }
 0x811   :  { %v2086_v43 = vadd.f32 %v2082_v8, %v2074_v15  ;;  %v2087_v45 = vadd.f32 %v2083_v3, %v2075_v41  ;;  %v2095_v47 = vrot.slane %v2091_v40, 2  ;;  %v1974_v58 = vmax.f32 %v1972_v56, 0.0 }
 0x812   :  { %v1975_v52 = vmax.f32 %v1973_v53, 0.0  ;;  %v2106_v7 = vrot.slane %v2102_v5, 3  ;;  %v2107_v39 = vrot.slane %v2103_v6, 3  ;;  %v1977_v22 = vstv %s3634_s6 }
 0x813   :  { %v2098_v32 = vadd.f32 %v2094_v33, %v2086_v43  ;;  %v2099_v42 = vadd.f32 %v2095_v47, %v2087_v45  ;;  %v2113_v51 = vstv %s3645_s8  ;;  %v1838_v60 = vadd.f32 %v1836_v19, %v1696_v2 }
 0x814   :  { %v1839_v9 = vadd.f32 %v1837_v4, %v1697_v20  ;;  %v2474_v1 = vmov 1966171168   ;;  %v2134_v13 = vlaneseq  ;;  %v1978_v16 = vmul.f32 %v1977_v22, %v1974_v58 }
 0x815   :  { %v2110_v25 = vadd.f32 %v2106_v7, %v2098_v32  ;;  %v2111_v38 = vadd.f32 %v2107_v39, %v2099_v42  ;;  %v2132_v48 = vunpack.c.l.s4 %v2474_v1  ;;  %v1979_v23 = vmul.f32 %v1977_v22, %v1975_v52 }
 0x816   :  { %v2119_v57 = vstv %s2399_s9  ;;  %v1980_v55 = vadd.f32 %v1978_v16, %v1838_v60  ;;  %v2135_v49 = vshrl.u32 %v2134_v13, 7  ;;  %v2125_v18 = vstv %s3740_s10 }
 0x817   :  { %v2114_v28 = vadd.f32 %v2113_v51, %v2110_v25  ;;  %v2115_v12 = vadd.f32 %v2113_v51, %v2111_v38  ;;  %v1981_v11 = vadd.f32 %v1979_v23, %v1839_v9  ;;  %v2133_v44 = vunpack.c.0.s8 %v2132_v48 }
 0x818   :  { %vm2148_vm7 = vcmp.lt.s32.totalorder %v2134_v13, 256 }
 0x819   :  { %v2116_v30 = vmax.f32 %v2114_v28, 0.0  ;;  %v2117_v29 = vmax.f32 %v2115_v12, 0.0  ;;  %v2136_v35 = vsub.s32 %v2133_v44, %v2135_v49 }
 0x81b   :  { %v2120_v36 = vmul.f32 %v2119_v57, %v2116_v30  ;;  %v2121_v21 = vmul.f32 %v2119_v57, %v2117_v29 }
 0x81d   :  { %v2122_v10 = vadd.f32 %v2120_v36, %v1980_v55  ;;  %v2123_v26 = vadd.f32 %v2121_v21, %v1981_v11 }
 0x81f   :  { %v2126_v34 = vadd.f32 %v2125_v18, %v2122_v10  ;;  %v2127_v17 = vadd.f32 %v2125_v18, %v2123_v26 }
 0x821   :  { %v2130_v24 = vcombine.low %v2126_v34, %v2127_v17 }
 0x823   :  { %v2137_v50 = vrot.slane %v2130_v24, %v2136_v35 }
 0x825   :  { %v2144_v14 = vrot.slane %v2137_v50, %v2136_v35 }
 0x827   :  { %2150 = vst.msk [vmem:[#allocation9] sm:$0x3] %vm2148_vm7, %v2144_v14 }
 0x828   :  { %2455 = shalt.err (!%p2452_p5)
}
 0x829   :  { %s3741_s16 = sld [smem:[#allocation26_spill]] }
 0x82f   :  { %2160 = dma.vmem_to_hbm [thread:$0]  %s2158_s12, 32, %s3741_s16, [#allocation4]  }
 0x830   :  { %2468 = dma.done.wait [#allocation4], 32  }
 0x831   :  { %2469 = vsyncadd [#allocation4], 4294967264 }
 0x832   :  { %2164 = vsyncpa [#allocation4], 1 }
 0x833   :  { %2165 = vsyncpa [#allocation5], 1 }
 0x834   :  { %2166 = vsyncpa [#allocation7], 1 }

</bundles_post_ra>
